<compile_context>
chip_gen: v7x
topology: tpu7x:2x2x1
jax: 0.10.0
libtpu: 0.0.40
codegen_flags: <defaults>
</compile_context>

<pallas_src>
import functools

import numpy as np
import jax
import jax.numpy as jnp
from jax.experimental import pallas as pl
from jax.experimental.pallas import tpu as pltpu


def _round_up(v, m):
    return ((v + m - 1) // m) * m


# ------------------------- Pallas kernel (hot path) -------------------------

def _conv1xk_kernel(x_ref, w_ref, o_ref, *, k_size, stride, cin, wout_pad):
    """One tile: tb spatial rows of the (1, kSize) conv as a single MXU GEMM.

    x_ref: (tb, Wq, stride*Cin)   activation block, compute dtype (bf16), read once
    w_ref: (kSize*Cin, Cout)      fused-tap weights, compute dtype
    o_ref: (tb*Wout_pad, Cout)    output block (last dim = Cout, no lane padding in HBM)
    """
    tb = x_ref.shape[0]

    taps = []
    for kw in range(k_size):                       # kSize is small & static -> unrolled
        a, r = kw // stride, kw % stride
        # window for tap kw: x[b, wo*stride + kw, ci] for wo in [0, Wout_pad)
        win = x_ref[:, a:a + wout_pad, r * cin:(r + 1) * cin]     # (tb, Wout_pad, Cin) bf16
        # Wout_pad % 16 == 0 -> collapsing the leading dims is layout preserving.
        taps.append(win.reshape(tb * wout_pad, cin))
    # Fused-K LHS: (M, kSize*Cin); one GEMM -> one accumulator pass inside the MXU.
    lhs = taps[0] if k_size == 1 else jnp.concatenate(taps, axis=-1)

    o_ref[...] = jnp.dot(lhs, w_ref[...],
                         preferred_element_type=jnp.float32).astype(o_ref.dtype)


# -------------------- generation-aware tiling / VMEM budgets --------------------

@functools.lru_cache(maxsize=1)
def _chip_config():
    """Per-generation (budget_bytes, vmem_limit_bytes, two_tensorcores)."""
    kind = ""
    try:
        kind = jax.devices()[0].device_kind.lower().replace(" ", "")
    except Exception:
        pass
    if "v5lite" in kind or "v5e" in kind:
        budget, limit, two_tc = 28 << 20, 96 << 20, False     # 128 MiB VMEM, 1 TC
    elif "v6" in kind:
        budget, limit, two_tc = 56 << 20, 100 << 20, False    # 128 MiB VMEM, 1 TC
    elif "7" in kind:
        budget, limit, two_tc = 20 << 20, 46 << 20, True      # 64 MiB VMEM, 2 TCs
    elif "v5" in kind or "v4" in kind:                         # v5p / v4 megacore
        budget, limit, two_tc = 40 << 20, 96 << 20, True
    else:
        budget, limit, two_tc = 16 << 20, 64 << 20, False
    try:  # never exceed what the chip actually reports
        vmem_cap = int(pltpu.get_tpu_info().vmem_capacity_bytes)
        limit = min(limit, int(vmem_cap * 0.75))
        budget = min(budget, int(vmem_cap * 0.35))
    except Exception:
        pass
    return budget, limit, two_tc


def _pick_tiles(nh, wq, sw_cin, wout_pad, cout, k_cin, in_isz, out_isz, budget, two_tc):
    """Rows-per-step (tb) and step count.  Per-step VMEM (physical, lane/sublane
    padded, incl. in-kernel temporaries) stays under `budget`; single-TC chips may
    take one big step, 2-TC chips keep an even step count."""
    lane = 128
    x_row = _round_up(wq, 16) * _round_up(sw_cin, lane) * in_isz    # input block row
    o_row = wout_pad * _round_up(cout, lane) * out_isz              # output block row
    lhs_row = wout_pad * _round_up(k_cin, lane) * in_isz            # fused-GEMM LHS temp
    acc_row = wout_pad * _round_up(cout, lane) * 4                  # f32 dot result temp
    per_row = 2 * x_row + 2 * o_row + lhs_row + acc_row             # dbl-buffered I/O + temps
    w_bytes = 2 * _round_up(k_cin, 16) * _round_up(cout, lane) * in_isz

    tb = max(1, (budget - w_bytes) // per_row)
    min_steps = 2 if (two_tc and nh >= 2) else 1
    tb = min(tb, max(1, -(-nh // min_steps)), nh)
    steps = -(-nh // tb)
    if two_tc and steps > 1 and steps % 2 == 1:                     # keep both TCs busy
        steps += 1
        tb = max(1, -(-nh // steps))
        steps = -(-nh // tb)
    return tb, steps


# ----------------------------- Module wrapper --------------------------------

@functools.partial(jax.jit, static_argnames=("stride", "compute_dtype", "out_dtype"))
def conv_1xk(x_nchw, weight_oihw, stride=1, *,
             compute_dtype=jnp.bfloat16, out_dtype=jnp.float32):
    """Equivalent of C.forward: Conv2d(nIn, nOut, (1, kSize), stride, bias=False).

    x_nchw:      (N, Cin, H, W)
    weight_oihw: (Cout, Cin, 1, kSize)
    returns:     (N, Cout, Hout, Wout) in out_dtype (default float32, like the module)
    """
    N, Cin, H, W = x_nchw.shape
    Cout, Cin_w, kh, kSize = weight_oihw.shape
    assert Cin_w == Cin and kh == 1, (weight_oihw.shape, x_nchw.shape)
    s = int(stride)
    H_out = (H - 1) // s + 1
    W_out = (W - kSize) // s + 1
    if H_out <= 0 or W_out <= 0:
        raise ValueError(f"Degenerate output shape: H_out={H_out}, W_out={W_out}")

    wout_pad = _round_up(W_out, 16)   # keeps the in-kernel row collapse layout-preserving
    nh = N * H_out
    k_cin = kSize * Cin

    # ---- glue: cast FIRST (move bf16, not f32), then NCHW -> (nh, Wq, stride*Cin) ----
    # TODO(synk): if the surrounding model keeps activations NHWC end-to-end, the entry
    # and exit transposes can be dropped entirely.
    # TODO(synk): for stride*Cin << 128 the block's lane axis is mostly padding (narrow
    # DMA segments); repacking a factor of W into the lane axis would restore lane/DMA
    # density for very narrow channel counts.
    x = x_nchw.astype(compute_dtype)
    x = x[:, :, :(H_out - 1) * s + 1:s, :]                  # (N, Cin, H_out, W)
    x = jnp.transpose(x, (0, 2, 3, 1))                      # (N, H_out, W, Cin)
    w_need = (wout_pad - 1) * s + kSize                     # W extent the kernel touches
    w_phys = _round_up(max(W, w_need), s)
    if w_phys > W:
        x = jnp.pad(x, ((0, 0), (0, 0), (0, w_phys - W), (0, 0)))
    wq = w_phys // s
    x = x.reshape(nh, wq, s * Cin)

    # weights: (Cout, Cin, 1, kSize) -> (kSize*Cin, Cout); rows tap-major to match the
    # in-kernel lane concat.  No Cout padding.
    w = jnp.transpose(weight_oihw[:, :, 0, :], (2, 1, 0)).reshape(k_cin, Cout)
    w = w.astype(compute_dtype)

    budget, vmem_limit, two_tc = _chip_config()
    tb, steps = _pick_tiles(nh, wq, s * Cin, wout_pad, Cout, k_cin,
                            np.dtype(compute_dtype).itemsize,
                            np.dtype(out_dtype).itemsize, budget, two_tc)
    nh_pad = tb * steps
    if nh_pad > nh:                                         # explicit pad: no ragged tile
        x = jnp.pad(x, ((0, nh_pad - nh), (0, 0), (0, 0)))

    kernel = functools.partial(_conv1xk_kernel, k_size=kSize, stride=s,
                               cin=Cin, wout_pad=wout_pad)

    out = pl.pallas_call(
        kernel,
        out_shape=jax.ShapeDtypeStruct((nh_pad * wout_pad, Cout), out_dtype),
        grid_spec=pltpu.PrefetchScalarGridSpec(
            num_scalar_prefetch=0,
            grid=(steps,),
            in_specs=[
                pl.BlockSpec((tb, wq, s * Cin), lambda i: (i, 0, 0)),
                pl.BlockSpec((k_cin, Cout), lambda i: (0, 0)),
            ],
            out_specs=pl.BlockSpec((tb * wout_pad, Cout), lambda i: (i, 0)),
        ),
        compiler_params=pltpu.CompilerParams(
            dimension_semantics=("parallel",),
            vmem_limit_bytes=vmem_limit,
        ),
    )(x, w)

    # strip row / Wout padding; back to NCHW (cheap: output is Cout-wide, not 128-padded)
    out = out[: nh * wout_pad].reshape(N, H_out, wout_pad, Cout)[:, :, :W_out, :]
    return jnp.transpose(out, (0, 3, 1, 2))


# ---------------------------------- Demo -------------------------------------

if __name__ == "__main__":
    # Module hyperparameters (small, consistent with the forward pass)
    nIn, nOut, kSize, stride = 4, 8, 3, 1
    N, H, W = 2, 16, 16

    key = jax.random.PRNGKey(0)
    kx, kwt = jax.random.split(key)

    x = jax.random.normal(kx, (N, nIn, H, W), dtype=jnp.float32)
    fan_in = nIn * 1 * kSize
    weight = jax.random.normal(kwt, (nOut, nIn, 1, kSize), dtype=jnp.float32) / jnp.sqrt(fan_in)

    out = conv_1xk(x, weight, stride=stride)
    out = jax.block_until_ready(out)

    # Cross-check against XLA's reference convolution (full-precision reference)
    ref = jax.lax.conv_general_dilated(
        x, weight, window_strides=(stride, stride), padding="VALID",
        dimension_numbers=("NCHW", "OIHW", "NCHW"),
        precision=jax.lax.Precision.HIGHEST,
    )
    assert out.shape == ref.shape, (out.shape, ref.shape)
    # bf16 MXU operands with f32 accumulation -> loosened tolerance vs f32 reference
    assert jnp.allclose(out, ref, atol=5e-2, rtol=5e-2), float(jnp.max(jnp.abs(out - ref)))

    print("KERNEL_OK")
</pallas_src>

<mosaic_0001>
module attributes {stable_mosaic.version = 11 : i64} {
  func.func @_conv1xk_kernel(%arg0: i32, %arg1: memref<32x18x4xbf16, #tpu.memory_space<vmem>>, %arg2: memref<12x8xbf16, #tpu.memory_space<vmem>>, %arg3: memref<512x8xf32, #tpu.memory_space<vmem>>) attributes {dimension_semantics = [#tpu.dimension_semantics<parallel>], iteration_bounds = array<i64: 1>, scalar_prefetch = 0 : i64, scratch_operands = 0 : i64, tpu.core_type = #tpu.core_type<tc>, window_params = [{transform_indices = @transform_0, window_bounds = array<i64: 32, 18, 4>}, {pipeline_mode = #tpu.pipeline_mode<synchronous>, transform_indices = @transform_1, window_bounds = array<i64: 12, 8>}, {transform_indices = @transform_2, window_bounds = array<i64: 512, 8>}]} {
    %c0 = arith.constant 0 : index
    %c0_0 = arith.constant 0 : index
    %c0_1 = arith.constant 0 : index
    %0 = vector.load %arg1[%c0, %c0_0, %c0_1] : memref<32x18x4xbf16, #tpu.memory_space<vmem>>, vector<32x16x4xbf16>
    %1 = vector.shape_cast %0 : vector<32x16x4xbf16> to vector<512x4xbf16>
    %c0_2 = arith.constant 0 : index
    %c1 = arith.constant 1 : index
    %c0_3 = arith.constant 0 : index
    %2 = vector.load %arg1[%c0_2, %c1, %c0_3] : memref<32x18x4xbf16, #tpu.memory_space<vmem>>, vector<32x16x4xbf16>
    %3 = vector.shape_cast %2 : vector<32x16x4xbf16> to vector<512x4xbf16>
    %c0_4 = arith.constant 0 : index
    %c2 = arith.constant 2 : index
    %c0_5 = arith.constant 0 : index
    %4 = vector.load %arg1[%c0_4, %c2, %c0_5] : memref<32x18x4xbf16, #tpu.memory_space<vmem>>, vector<32x16x4xbf16>
    %5 = vector.shape_cast %4 : vector<32x16x4xbf16> to vector<512x4xbf16>
    %6 = tpu.concatenate %1, %3, %5 in 1 : vector<512x4xbf16>, vector<512x4xbf16>, vector<512x4xbf16> -> vector<512x12xbf16>
    %c0_6 = arith.constant 0 : index
    %c0_7 = arith.constant 0 : index
    %7 = vector.load %arg2[%c0_6, %c0_7] : memref<12x8xbf16, #tpu.memory_space<vmem>>, vector<12x8xbf16>
    %cst = arith.constant dense<0.000000e+00> : vector<512x8xf32>
    %8 = tpu.matmul %6, %7, %cst {dimension_numbers = #tpu.dot_dimension_numbers<[1], [0], [0], [1], [0, 0, 1, 1], [], []>} : vector<512x12xbf16>, vector<12x8xbf16>, vector<512x8xf32> -> vector<512x8xf32>
    %c0_8 = arith.constant 0 : index
    %c0_9 = arith.constant 0 : index
    %9 = vector.load %arg3[%c0_8, %c0_9] : memref<512x8xf32, #tpu.memory_space<vmem>>, vector<512x8xf32>
    tpu.vector_store %arg3[%c0_8, %c0_9], %8 {strides = array<i32>} : memref<512x8xf32, #tpu.memory_space<vmem>>, vector<512x8xf32>,
    return
  }
  func.func @transform_0(%arg0: i32) -> (i32, i32, i32) {
    %c0_i32 = arith.constant 0 : i32
    %c0_i32_0 = arith.constant 0 : i32
    %c0_i32_1 = arith.constant 0 : i32
    return %arg0, %c0_i32, %c0_i32_0 : i32, i32, i32
  }
  func.func @transform_1(%arg0: i32) -> (i32, i32) {
    %c0_i32 = arith.constant 0 : i32
    %c0_i32_0 = arith.constant 0 : i32
    %c0_i32_1 = arith.constant 0 : i32
    return %c0_i32, %c0_i32_0 : i32, i32
  }
  func.func @transform_2(%arg0: i32) -> (i32, i32) {
    %c0_i32 = arith.constant 0 : i32
    %c0_i32_0 = arith.constant 0 : i32
    return %arg0, %c0_i32 : i32, i32
  }
}

</mosaic_0001>

<bundles_post_ra>
// kernel: conv_1xk.1
= control target key start
LH: loop header
LB: loop body
LE: loop exit
PB: predicated region body
PF: predicated region fallthrough
CT: control target
= control target key end

     0   :  { %7 = vsyncpa [#allocation3], 0  ;;  %s3729_s0 = inlined_call_operand.hbm [shape: bf16[32,18,4], index: 0, kind: input, shape index: {}]   ;;  %s3730_s1 = inlined_call_operand.hbm [shape: bf16[12,8], index: 1, kind: input, shape index: {}]   ;;  %s3731_s2 = inlined_call_operand.hbm [shape: f32[512,8], index: 2, kind: output, shape index: {}]  }
   0x1   :  { %8 = vsyncpa [#allocation6], 0 }
   0x2   :  { %9 = vsyncpa [#allocation4], 0  ;;  %s2738_s9 = smov [#allocation2]   ;;  %s2666_s13 = scalar_lea.hbm %s3729_s0, 6144 }
   0x3   :  { %s15_s10 = sshll.u32 %s2738_s9, 4  ;;  %p2667_p0 = scmp.ne.s32.totalorder %s3729_s0, %s2666_s13  ;;  %s16_s10 = int_to_ptr.vmem [resolvable:$true] %s15_s10 }
   0x4   :  { %p2670_p1 = scmp.lt.u32.totalorder %s2666_s13, %s3729_s0 }
   0x6   :  { %p2672_p2 = pnand %p2670_p1, %p2667_p0 }
   0x8   :  { %2675 = shalt.err (!%p2672_p2)
}
   0x9   :  { %s2676_s18 = scalar_lea.vmem %s16_s10, 6144  ;;  %p2681_p4 = scmp.lt.s32.totalorder %s16_s10, %s16_s10 }
   0xa   :  { %p2677_p3 = scmp.ne.s32.totalorder %s16_s10, %s2676_s18  ;;  %p2682_p5 = scmp.lt.s32.totalorder %s2676_s18, %s2676_s18 }
   0xc   :  { %p2683_p6 = por %p2682_p5, %p2681_p4 }
   0xe   :  { %p2684_p7 = pnand %p2683_p6, %p2677_p3 }
  0x10   :  { %2687 = shalt.err (!%p2684_p7)
}
  0x11   :  { %s2739_s19 = smov 64   ;;  %s2740_s20 = smov 4  }
  0x12   :  { %21 = dma.hbm_to_vmem [thread:$0]  %s3729_s0, 6144, %s16_s10, [#allocation3], %s2739_s19, %s2739_s19, %s2740_s20  }
  0x13   :  { %s2741_s23 = smov [#allocation5]   ;;  %s2688_s27 = scalar_lea.hbm %s3730_s1, 128 }
  0x14   :  { %s27_s24 = sshll.u32 %s2741_s23, 4  ;;  %p2689_p8 = scmp.ne.s32.totalorder %s3730_s1, %s2688_s27  ;;  %s28_s24 = int_to_ptr.vmem [resolvable:$true] %s27_s24 }
  0x15   :  { %p2692_p9 = scmp.lt.u32.totalorder %s2688_s27, %s3730_s1 }
  0x17   :  { %p2694_p10 = pnand %p2692_p9, %p2689_p8 }
  0x19   :  { %2697 = shalt.err (!%p2694_p10)
}
  0x1a   :  { %s2698_s4 = scalar_lea.vmem %s28_s24, 128  ;;  %p2703_p12 = scmp.lt.s32.totalorder %s28_s24, %s28_s24 }
  0x1b   :  { %p2699_p11 = scmp.ne.s32.totalorder %s28_s24, %s2698_s4  ;;  %p2704_p13 = scmp.lt.s32.totalorder %s2698_s4, %s2698_s4 }
  0x1d   :  { %p2705_p0 = por %p2704_p13, %p2703_p12 }
  0x1f   :  { %p2706_p1 = pnand %p2705_p0, %p2699_p11 }
  0x21   :  { %2709 = shalt.err (!%p2706_p1)
}
  0x22   :  { %33 = dma.hbm_to_vmem [thread:$0]  %s3730_s1, 128, %s28_s24, [#allocation6], %s2739_s19, %s2739_s19, %s2740_s20  }
  0x23   :  { %2732 = dma.done.wait [#allocation3], 6144  }
  0x24   :  { %2733 = vsyncadd [#allocation3], 4294961152 }
  0x25   :  { %2734 = dma.done.wait [#allocation6], 128  }
  0x26   :  { %2735 = vsyncadd [#allocation6], 4294967168  ;;  %vm1036_vm0 = vcmask 1042432   ;;  %vm1037_vm1 = vcmask 1046532   ;;  %v2790_v1 = vld [vmem:[#allocation2 + $0xc4] sm:$0xf] }
  0x27   :  { %vm2786_vm2 = vmor %vm1036_vm0, %vm1037_vm1  ;;  %v2792_v2 = vld [vmem:[#allocation2 + $0xc8] sm:$0x1]  ;;  %v924_v3 = vld [vmem:[#allocation2 + $0xc0] sm:$0xe]  ;;  %v1153_v5 = vrot.slane %v2790_v1, 5  ;;  %v534_v8 = vshll.u32 %v2790_v1, 16 }
  0x28   :  { %v2336_v4 = vrot.slane %v924_v3, 9  ;;  %v1156_v6 = vrot.slane %v2792_v2, 5  ;;  %v2796_v7 = vld [vmem:[#allocation2 + $0x4] sm:$0xf]  ;;  %v2799_v9 = vld [vmem:[#allocation2 + $0x8] sm:$0x1] }
  0x29   :  { %v908_v10 = vld [vmem:[#allocation2] sm:$0xe]  ;;  %v1041_v11 = vrot.slane %v2796_v7, 5  ;;  %vm137_vm3 = vsmask.f32 3328  ;;  %v150_v12 = vshll.u32 %v2796_v7, 16 }
  0x2a   :  { %vm138_vm4 = vsmask.f32 7440  ;;  %v1154_v13 = vsel %vm2786_vm2, %v2336_v4, %v1153_v5  ;;  %v1155_v14 = vrot.slane %v1153_v5, 4  ;;  %v2320_v15 = vrot.slane %v908_v10, 9  ;;  %v2806_v17 = vld [vmem:[#allocation2 + $0xd0] sm:$0xf] }
  0x2b   :  { %v1044_v16 = vrot.slane %v2799_v9, 5  ;;  %v1043_v18 = vrot.slane %v1041_v11, 4  ;;  %v2808_v19 = vld [vmem:[#allocation2 + $0xd4] sm:$0x1]  ;;  %v925_v20 = vld [vmem:[#allocation2 + $0xcc] sm:$0xe]  ;;  %vm2832_vm5 = vmor %vm137_vm3, %vm138_vm4 }
  0x2c   :  { %v1160_v21 = vrot.slane %v2806_v17, 5  ;;  %v1157_v22 = vsel %vm2786_vm2, %v1155_v14, %v1156_v6  ;;  %v1042_v23 = vsel %vm2786_vm2, %v2320_v15, %v1041_v11  ;;  %v2337_v24 = vrot.slane %v925_v20, 9  ;;  %v44_v26 = vld [vmem:[#allocation2 + $0x10] sm:$0xf]  ;;  %v106_v27 = vld [vmem:[#allocation2 + $0x14] sm:$0x1] }
  0x2d   :  { %v1163_v25 = vrot.slane %v2808_v19, 5  ;;  %v2432_v28 = vcombine.low %v1154_v13, %v1157_v22  ;;  %v1045_v29 = vsel %vm2786_vm2, %v1043_v18, %v1044_v16  ;;  %v909_v31 = vld [vmem:[#allocation2 + $0xc] sm:$0xe]  ;;  %v1048_v32 = vrot.slane %v44_v26, 5  ;;  %s2742_s1 = smov 8   ;;  %s2743_s6 = smov [#allocation7]  }
  0x2e   :  { %v1162_v30 = vrot.slane %v1160_v21, 4  ;;  %v43_v33 = vld [vmem:[#allocation2 + $0xc] sm:$0xf]  ;;  %v2416_v34 = vcombine.low %v1042_v23, %v1045_v29  ;;  %v1161_v35 = vsel %vm2786_vm2, %v2337_v24, %v1160_v21  ;;  %v2321_v36 = vrot.slane %v909_v31, 9  ;;  %v41_v42 = vld [vmem:[#allocation2] sm:$0xf] }
  0x2f   :  { %v1051_v37 = vrot.slane %v106_v27, 5  ;;  %1679 = vrot.lane.b32.xlu1 %v2432_v28, %s2742_s1  ;;  %v1050_v39 = vrot.slane %v1048_v32, 4  ;;  %v165_v40 = vshrl.u32 %v43_v33, 16  ;;  %v168_v41 = vshll.u32 %v43_v33, 16  ;;  %v75_v55 = vld [vmem:[#allocation2 + $0xcc] sm:$0xf] }
  0x30   :  { %v1164_v38 = vsel %vm2786_vm2, %v1162_v30, %v1163_v25  ;;  %1647 = vrot.lane.b32.xlu0 %v2416_v34, %s2742_s1  ;;  %v1049_v44 = vsel %vm2786_vm2, %v2321_v36, %v1048_v32  ;;  %v174_v45 = vshll.u32 %v44_v26, 16  ;;  %v178_v46 = vshrl.u32 %v44_v26, 16  ;;  %v73_v21 = vld [vmem:[#allocation2 + $0xc0] sm:$0xf]  ;;  %s2307_s7 = sshll.u32 %s2743_s6, 4  ;;  %s2308_s7 = int_to_ptr.vmem [resolvable:$true] %s2307_s7 }
  0x31   :  { %v2433_v43 = vcombine.low %v1161_v35, %v1164_v38  ;;  %v1052_v47 = vsel %vm2786_vm2, %v1050_v39, %v1051_v37  ;;  %v167_v48 = vrot.slane %v165_v40, 4  ;;  %v170_v49 = vrot.slane %v168_v41, 5  ;;  %v2852_v39 = vld [vmem:[#allocation2 + $0xdc] sm:$0xf]  ;;  %s2710_s8 = scalar_lea.vmem %s2308_s7, 8192  ;;  %p2715_p3 = scmp.lt.s32.totalorder %s2308_s7, %s2308_s7 }
  0x32   :  { %v184_v50 = vshll.u32 %v106_v27, 16  ;;  %v2417_v51 = vcombine.low %v1049_v44, %v1052_v47  ;;  %v176_v52 = vrot.slane %v174_v45, 5  ;;  %v180_v53 = vrot.slane %v178_v46, 4  ;;  %p2711_p2 = scmp.ne.s32.totalorder %s2308_s7, %s2710_s8  ;;  %p2716_p4 = scmp.lt.s32.totalorder %s2710_s8, %s2710_s8 }
  0x33   :  { %v141_v54 = vshrl.u32 %v41_v42, 16  ;;  %1681 = vrot.lane.b32.xlu1 %v2433_v43, %s2742_s1  ;;  %v171_v56 = vor.u32 %v170_v49, %v167_v48  ;;  %v144_v58 = vshll.u32 %v41_v42, 16  ;;  %v152_v59 = vrot.slane %v150_v12, 5 }
  0x34   :  { %v186_v57 = vrot.slane %v184_v50, 5  ;;  %1649 = vrot.lane.b32.xlu0 %v2417_v51, %s2742_s1  ;;  %v181_v61 = vor.u32 %v180_v53, %v176_v52  ;;  %v154_v63 = vshrl.u32 %v2796_v7, 16  ;;  %v160_v3 = vshll.u32 %v2799_v9, 16  ;;  %p2717_p5 = por %p2716_p4, %p2715_p3 }
  0x35   :  { %v143_v62 = vrot.slane %v141_v54, 4  ;;  %v172_v4 = vrot.slane %v171_v56, 4  ;;  %v146_v5 = vrot.slane %v144_v58, 5  ;;  %v549_v6 = vshrl.u32 %v75_v55, 16 }
  0x36   :  { %v552_v10 = vshll.u32 %v75_v55, 16  ;;  %v182_v11 = vrot.slane %v181_v61, 4  ;;  %v156_v12 = vrot.slane %v154_v63, 4  ;;  %v162_v13 = vrot.slane %v160_v3, 5  ;;  %v2865_v55 = vld [vmem:[#allocation2 + $0x1c] sm:$0xf]  ;;  %p2718_p6 = pnand %p2717_p5, %p2711_p2 }
  0x37   :  { %v558_v14 = vshll.u32 %v2806_v17, 16  ;;  %v177_v15 = vsel %vm2832_vm5, %v172_v4, %v176_v52  ;;  %v147_v16 = vor.u32 %v146_v5, %v143_v62  ;;  %v551_v18 = vrot.slane %v549_v6, 4  ;;  %v45_v52 = vld [vmem:[#allocation2 + $0x18] sm:$0xf]  ;;  %v2871_v6 = vld [vmem:[#allocation2 + $0x20] sm:$0x1] }
  0x38   :  { %v554_v20 = vrot.slane %v552_v10, 5  ;;  %v187_v7 = vsel %vm2832_vm5, %v182_v11, %v186_v57  ;;  %v157_v9 = vor.u32 %v156_v12, %v152_v59  ;;  %v562_v23 = vshrl.u32 %v2806_v17, 16  ;;  %v77_v17 = vld [vmem:[#allocation2 + $0xd8] sm:$0xf] }
  0x39   :  { %v560_v22 = vrot.slane %v558_v14, 5  ;;  %v2385_v24 = vcombine.low %v177_v15, %v187_v7  ;;  %v148_v25 = vrot.slane %v147_v16, 4  ;;  %v568_v27 = vshll.u32 %v2808_v19, 16  ;;  %v79_v16 = vld [vmem:[#allocation2 + $0xe4] sm:$0xf] }
  0x3a   :  { %v555_v26 = vor.u32 %v554_v20, %v551_v18  ;;  %v158_v28 = vrot.slane %v157_v9, 4  ;;  %v564_v29 = vrot.slane %v562_v23, 4  ;;  %v525_v30 = vshrl.u32 %v73_v21, 16  ;;  %v2877_v9 = vld [vmem:[#allocation2 + $0xe8] sm:$0xf] }
  0x3b   :  { %v528_v31 = vshll.u32 %v73_v21, 16  ;;  %1489 = vrot.lane.b32.xlu1 %v2385_v24, %s2740_s20  ;;  %v153_v32 = vsel %vm2832_vm5, %v148_v25, %v152_v59  ;;  %v570_v34 = vrot.slane %v568_v27, 5  ;;  %v536_v35 = vrot.slane %v534_v8, 5  ;;  %v2858_v8 = vld [vmem:[#allocation2 + $0xe0] sm:$0x1] }
  0x3c   :  { %v556_v33 = vrot.slane %v555_v26, 4  ;;  %v163_v36 = vsel %vm2832_vm5, %v158_v28, %v162_v13  ;;  %v565_v37 = vor.u32 %v564_v29, %v560_v22  ;;  %v527_v19 = vrot.slane %v525_v30, 4  ;;  %v2884_v28 = vld [vmem:[#allocation2 + $0xec] sm:$0x1] }
  0x3d   :  { %v530_v38 = vrot.slane %v528_v31, 5  ;;  %v2384_v40 = vcombine.low %v153_v32, %v163_v36  ;;  %v538_v42 = vshrl.u32 %v2790_v1, 16  ;;  %v544_v43 = vshll.u32 %v2792_v2, 16  ;;  %v47_v31 = vld [vmem:[#allocation2 + $0x24] sm:$0xf] }
  0x3e   :  { %v561_v41 = vsel %vm2832_vm5, %v556_v33, %v560_v22  ;;  %v566_v44 = vrot.slane %v565_v37, 4  ;;  %v573_v46 = vshrl.u32 %v77_v17, 16  ;;  %v576_v47 = vshll.u32 %v77_v17, 16 }
  0x3f   :  { %v531_v45 = vor.u32 %v530_v38, %v527_v19  ;;  %1487 = vrot.lane.b32.xlu0 %v2384_v40, %s2740_s20  ;;  %v540_v48 = vrot.slane %v538_v42, 4  ;;  %v546_v49 = vrot.slane %v544_v43, 5  ;;  %v582_v50 = vshll.u32 %v2852_v39, 16  ;;  %v2889_v38 = vld [vmem:[#allocation2 + $0x28] sm:$0xf] }
  0x40   :  { %v586_v51 = vshrl.u32 %v2852_v39, 16  ;;  %v571_v1 = vsel %vm2832_vm5, %v566_v44, %v570_v34  ;;  %v575_v2 = vrot.slane %v573_v46, 4  ;;  %v578_v54 = vrot.slane %v576_v47, 5  ;;  %v2895_v47 = vld [vmem:[#allocation2 + $0x2c] sm:$0x1] }
  0x41   :  { %v532_v53 = vrot.slane %v531_v45, 4  ;;  %v2401_v56 = vcombine.low %v561_v41, %v571_v1  ;;  %v541_v57 = vor.u32 %v540_v48, %v536_v35  ;;  %v584_v58 = vrot.slane %v582_v50, 5 }
  0x42   :  { %v588_v59 = vrot.slane %v586_v51, 4  ;;  %v579_v62 = vor.u32 %v578_v54, %v575_v2  ;;  %v592_v63 = vshll.u32 %v2858_v8, 16  ;;  %v189_v3 = vshrl.u32 %v45_v52, 16 }
  0x43   :  { %v537_v61 = vsel %vm2832_vm5, %v532_v53, %v536_v35  ;;  %1521 = vrot.lane.b32.xlu1 %v2401_v56, %s2740_s20  ;;  %v542_v4 = vrot.slane %v541_v57, 4  ;;  %v192_v10 = vshll.u32 %v45_v52, 16  ;;  %v198_v11 = vshll.u32 %v2865_v55, 16  ;;  %v910_v57 = vld [vmem:[#allocation2 + $0x18] sm:$0xe] }
  0x44   :  { %v589_v5 = vor.u32 %v588_v59, %v584_v58  ;;  %v580_v12 = vrot.slane %v579_v62, 4  ;;  %v594_v13 = vrot.slane %v592_v63, 5  ;;  %v191_v14 = vrot.slane %v189_v3, 4 }
  0x45   :  { %v202_v15 = vshrl.u32 %v2865_v55, 16  ;;  %v547_v18 = vsel %vm2832_vm5, %v542_v4, %v546_v49  ;;  %v194_v21 = vrot.slane %v192_v10, 5  ;;  %v200_v7 = vrot.slane %v198_v11, 5  ;;  %v926_v49 = vld [vmem:[#allocation2 + $0xd8] sm:$0xe] }
  0x46   :  { %v590_v20 = vrot.slane %v589_v5, 4  ;;  %v2400_v22 = vcombine.low %v537_v61, %v547_v18  ;;  %v585_v23 = vsel %vm2832_vm5, %v580_v12, %v584_v58  ;;  %v208_v25 = vshll.u32 %v2871_v6, 16 }
  0x47   :  { %v204_v24 = vrot.slane %v202_v15, 4  ;;  %v195_v27 = vor.u32 %v194_v21, %v191_v14  ;;  %v597_v29 = vshrl.u32 %v79_v16, 16  ;;  %v600_v30 = vshll.u32 %v79_v16, 16  ;;  %v927_v14 = vld [vmem:[#allocation2 + $0xe4] sm:$0xe] }
  0x48   :  { %v595_v26 = vsel %vm2832_vm5, %v590_v20, %v594_v13  ;;  %1519 = vrot.lane.b32.xlu0 %v2400_v22, %s2740_s20  ;;  %v210_v34 = vrot.slane %v208_v25, 5  ;;  %v606_v35 = vshll.u32 %v2877_v9, 16  ;;  %v610_v19 = vshrl.u32 %v2877_v9, 16 }
  0x49   :  { %v2402_v32 = vcombine.low %v585_v23, %v595_v26  ;;  %v205_v33 = vor.u32 %v204_v24, %v200_v7  ;;  %v196_v17 = vrot.slane %v195_v27, 4  ;;  %v599_v36 = vrot.slane %v597_v29, 4  ;;  %v911_v23 = vld [vmem:[#allocation2 + $0x24] sm:$0xe] }
  0x4a   :  { %v602_v37 = vrot.slane %v600_v30, 5  ;;  %v608_v41 = vrot.slane %v606_v35, 5  ;;  %v616_v42 = vshll.u32 %v2884_v28, 16  ;;  %v213_v43 = vshrl.u32 %v47_v31, 16 }
  0x4b   :  { %1523 = vrot.lane.b32.xlu1 %v2402_v32, %s2740_s20  ;;  %v206_v40 = vrot.slane %v205_v33, 4  ;;  %v201_v44 = vsel %vm2832_vm5, %v196_v17, %v200_v7  ;;  %v612_v46 = vrot.slane %v610_v19, 4  ;;  %v216_v48 = vshll.u32 %v47_v31, 16  ;;  %v81_v31 = vld [vmem:[#allocation2 + $0xf0] sm:$0xf] }
  0x4c   :  { %v603_v45 = vor.u32 %v602_v37, %v599_v36  ;;  %v618_v51 = vrot.slane %v616_v42, 5  ;;  %v215_v52 = vrot.slane %v213_v43, 4  ;;  %v222_v1 = vshll.u32 %v2889_v38, 16  ;;  %v2930_v37 = vld [vmem:[#allocation2 + $0xf4] sm:$0xf] }
  0x4d   :  { %v211_v50 = vsel %vm2832_vm5, %v206_v40, %v210_v34  ;;  %v613_v54 = vor.u32 %v612_v46, %v608_v41  ;;  %v218_v56 = vrot.slane %v216_v48, 5  ;;  %v226_v59 = vshrl.u32 %v2889_v38, 16  ;;  %v2932_v19 = vld [vmem:[#allocation2 + $0xf8] sm:$0x1]  ;;  %v49_v43 = vld [vmem:[#allocation2 + $0x30] sm:$0xf] }
  0x4e   :  { %v2386_v53 = vcombine.low %v201_v44, %v211_v50  ;;  %v604_v2 = vrot.slane %v603_v45, 4  ;;  %v224_v58 = vrot.slane %v222_v1, 5  ;;  %v232_v61 = vshll.u32 %v2895_v47, 16 }
  0x4f   :  { %v2338_v62 = vrot.slane %v926_v49, 9  ;;  %v614_v3 = vrot.slane %v613_v54, 4  ;;  %v219_v4 = vor.u32 %v218_v56, %v215_v52  ;;  %v1167_v5 = vrot.slane %v2852_v39, 5  ;;  %v2945_v52 = vld [vmem:[#allocation2 + $0x38] sm:$0x1] }
  0x50   :  { %1491 = vrot.lane.b32.xlu0 %v2386_v53, %s2740_s20  ;;  %v609_v63 = vsel %vm2832_vm5, %v604_v2, %v608_v41  ;;  %v228_v10 = vrot.slane %v226_v59, 4  ;;  %v234_v11 = vrot.slane %v232_v61, 5  ;;  %v1170_v12 = vrot.slane %v2858_v8, 5  ;;  %v83_v56 = vld [vmem:[#allocation2 + $0xfc] sm:$0xf] }
  0x51   :  { %v2322_v13 = vrot.slane %v910_v57, 9  ;;  %v619_v15 = vsel %vm2832_vm5, %v614_v3, %v618_v51  ;;  %v220_v16 = vrot.slane %v219_v4, 4  ;;  %v1168_v18 = vsel %vm2786_vm2, %v2338_v62, %v1167_v5 }
  0x52   :  { %v1169_v20 = vrot.slane %v1167_v5, 4  ;;  %v2403_v21 = vcombine.low %v609_v63, %v619_v15  ;;  %v229_v7 = vor.u32 %v228_v10, %v224_v58  ;;  %v1055_v22 = vrot.slane %v2865_v55, 5 }
  0x53   :  { %v1058_v39 = vrot.slane %v2871_v6, 5  ;;  %v225_v8 = vsel %vm2832_vm5, %v220_v16, %v224_v58  ;;  %v2339_v25 = vrot.slane %v927_v14, 9  ;;  %v1174_v26 = vrot.slane %v2877_v9, 5 }
  0x54   :  { %v1171_v24 = vsel %vm2786_vm2, %v1169_v20, %v1170_v12  ;;  %1525 = vrot.lane.b32.xlu1 %v2403_v21, %s2740_s20  ;;  %v230_v27 = vrot.slane %v229_v7, 4  ;;  %v1056_v30 = vsel %vm2786_vm2, %v2322_v13, %v1055_v22  ;;  %v1057_v55 = vrot.slane %v1055_v22, 4  ;;  %v2954_v12 = vld [vmem:[#allocation2 + $0x100] sm:$0xf] }
  0x55   :  { %v2434_v29 = vcombine.low %v1168_v18, %v1171_v24  ;;  %v1175_v6 = vsel %vm2786_vm2, %v2339_v25, %v1174_v26  ;;  %v1176_v32 = vrot.slane %v1174_v26, 4  ;;  %v1177_v33 = vrot.slane %v2884_v28, 5  ;;  %v2956_v18 = vld [vmem:[#allocation2 + $0x104] sm:$0x1]  ;;  %v51_v26 = vld [vmem:[#allocation2 + $0x3c] sm:$0xf] }
  0x56   :  { %v2323_v34 = vrot.slane %v911_v23, 9  ;;  %v235_v35 = vsel %vm2832_vm5, %v230_v27, %v234_v11  ;;  %v1059_v9 = vsel %vm2786_vm2, %v1057_v55, %v1058_v39  ;;  %v1062_v17 = vrot.slane %v2889_v38, 5 }
  0x57   :  { %v1065_v36 = vrot.slane %v2895_v47, 5  ;;  %v2387_v40 = vcombine.low %v225_v8, %v235_v35  ;;  %v2418_v41 = vcombine.low %v1056_v30, %v1059_v9  ;;  %v1178_v28 = vsel %vm2786_vm2, %v1176_v32, %v1177_v33  ;;  %v2939_v47 = vld [vmem:[#allocation2 + $0x34] sm:$0xf]  ;;  %v2970_v35 = vld [vmem:[#allocation2 + $0x44] sm:$0x1] }
  0x58   :  { %v621_v42 = vshrl.u32 %v81_v31, 16  ;;  %1683 = vrot.lane.b32.xlu1 %v2434_v29, %s2742_s1  ;;  %v2435_v44 = vcombine.low %v1175_v6, %v1178_v28  ;;  %v1063_v45 = vsel %vm2786_vm2, %v2323_v34, %v1062_v17  ;;  %v1064_v38 = vrot.slane %v1062_v17, 4 }
  0x59   :  { %v624_v46 = vshll.u32 %v81_v31, 16  ;;  %1493 = vrot.lane.b32.xlu0 %v2387_v40, %s2740_s20  ;;  %v630_v49 = vshll.u32 %v2930_v37, 16  ;;  %v634_v50 = vshrl.u32 %v2930_v37, 16  ;;  %v640_v51 = vshll.u32 %v2932_v19, 16  ;;  %v2966_v31 = vld [vmem:[#allocation2 + $0x40] sm:$0xf] }
  0x5a   :  { %v623_v48 = vrot.slane %v621_v42, 4  ;;  %v1066_v1 = vsel %vm2786_vm2, %v1064_v38, %v1065_v36  ;;  %v237_v2 = vshrl.u32 %v49_v43, 16  ;;  %v240_v54 = vshll.u32 %v49_v43, 16 }
  0x5b   :  { %v626_v53 = vrot.slane %v624_v46, 5  ;;  %v2419_v57 = vcombine.low %v1063_v45, %v1066_v1  ;;  %v632_v58 = vrot.slane %v630_v49, 5  ;;  %v636_v59 = vrot.slane %v634_v50, 4  ;;  %v912_v49 = vld [vmem:[#allocation2 + $0x30] sm:$0xe] }
  0x5c   :  { %v642_v61 = vrot.slane %v640_v51, 5  ;;  %1685 = vrot.lane.b32.xlu1 %v2435_v44, %s2742_s1  ;;  %v239_v63 = vrot.slane %v237_v2, 4  ;;  %v242_v3 = vrot.slane %v240_v54, 5  ;;  %v246_v4 = vshll.u32 %v2939_v47, 16  ;;  %v928_v44 = vld [vmem:[#allocation2 + $0xf0] sm:$0xe] }
  0x5d   :  { %v627_v62 = vor.u32 %v626_v53, %v623_v48  ;;  %1651 = vrot.lane.b32.xlu0 %v2418_v41, %s2742_s1  ;;  %v637_v5 = vor.u32 %v636_v59, %v632_v58  ;;  %v250_v10 = vshrl.u32 %v2939_v47, 16  ;;  %v256_v11 = vshll.u32 %v2945_v52, 16 }
  0x5e   :  { %v645_v13 = vshrl.u32 %v83_v56, 16  ;;  %v243_v15 = vor.u32 %v242_v3, %v239_v63  ;;  %v248_v16 = vrot.slane %v246_v4, 5  ;;  %v648_v20 = vshll.u32 %v83_v56, 16  ;;  %v929_v63 = vld [vmem:[#allocation2 + $0xfc] sm:$0xe] }
  0x5f   :  { %v628_v14 = vrot.slane %v627_v62, 4  ;;  %v638_v21 = vrot.slane %v637_v5, 4  ;;  %v252_v7 = vrot.slane %v250_v10, 4  ;;  %v258_v22 = vrot.slane %v256_v11, 5 }
  0x60   :  { %v647_v39 = vrot.slane %v645_v13, 4  ;;  %v244_v8 = vrot.slane %v243_v15, 4  ;;  %v650_v24 = vrot.slane %v648_v20, 5  ;;  %v654_v25 = vshll.u32 %v2954_v12, 16 }
  0x61   :  { %v633_v23 = vsel %vm2832_vm5, %v628_v14, %v632_v58  ;;  %1653 = vrot.lane.b32.xlu0 %v2419_v57, %s2742_s1  ;;  %v643_v27 = vsel %vm2832_vm5, %v638_v21, %v642_v61  ;;  %v253_v29 = vor.u32 %v252_v7, %v248_v16  ;;  %v658_v30 = vshrl.u32 %v2954_v12, 16 }
  0x62   :  { %v664_v55 = vshll.u32 %v2956_v18, 16  ;;  %v2404_v6 = vcombine.low %v633_v23, %v643_v27  ;;  %v249_v32 = vsel %vm2832_vm5, %v244_v8, %v248_v16  ;;  %v651_v33 = vor.u32 %v650_v24, %v647_v39  ;;  %v913_v16 = vld [vmem:[#allocation2 + $0x3c] sm:$0xe]  ;;  %v85_v39 = vld [vmem:[#allocation2 + $0x108] sm:$0xf] }
  0x63   :  { %v656_v34 = vrot.slane %v654_v25, 5  ;;  %v254_v9 = vrot.slane %v253_v29, 4  ;;  %v660_v17 = vrot.slane %v658_v30, 4  ;;  %v261_v40 = vshrl.u32 %v51_v26, 16  ;;  %v3004_v27 = vld [vmem:[#allocation2 + $0x110] sm:$0x1] }
  0x64   :  { %v666_v36 = vrot.slane %v664_v55, 5  ;;  %1527 = vrot.lane.b32.xlu1 %v2404_v6, %s2740_s20  ;;  %v652_v41 = vrot.slane %v651_v33, 4  ;;  %v264_v28 = vshll.u32 %v51_v26, 16  ;;  %v270_v42 = vshll.u32 %v2966_v31, 16  ;;  %v3002_v26 = vld [vmem:[#allocation2 + $0x10c] sm:$0xf] }
  0x65   :  { %v274_v43 = vshrl.u32 %v2966_v31, 16  ;;  %v259_v45 = vsel %vm2832_vm5, %v254_v9, %v258_v22  ;;  %v661_v38 = vor.u32 %v660_v17, %v656_v34  ;;  %v263_v46 = vrot.slane %v261_v40, 4 }
  0x66   :  { %v280_v48 = vshll.u32 %v2970_v35, 16  ;;  %v2388_v50 = vcombine.low %v249_v32, %v259_v45  ;;  %v657_v51 = vsel %vm2832_vm5, %v652_v41, %v656_v34  ;;  %v266_v1 = vrot.slane %v264_v28, 5  ;;  %v53_v34 = vld [vmem:[#allocation2 + $0x48] sm:$0xf]  ;;  %v3017_v41 = vld [vmem:[#allocation2 + $0x4c] sm:$0xf] }
  0x67   :  { %v272_v53 = vrot.slane %v270_v42, 5  ;;  %v662_v2 = vrot.slane %v661_v38, 4  ;;  %v276_v54 = vrot.slane %v274_v43, 4  ;;  %v2340_v57 = vrot.slane %v928_v44, 9 }
  0x68   :  { %v282_v56 = vrot.slane %v280_v48, 5  ;;  %1495 = vrot.lane.b32.xlu0 %v2388_v50, %s2740_s20  ;;  %v267_v58 = vor.u32 %v266_v1, %v263_v46  ;;  %v1181_v59 = vrot.slane %v2930_v37, 5  ;;  %v1184_v61 = vrot.slane %v2932_v19, 5  ;;  %v3021_v46 = vld [vmem:[#allocation2 + $0x50] sm:$0x1] }
  0x69   :  { %v2324_v62 = vrot.slane %v912_v49, 9  ;;  %v667_v3 = vsel %vm2832_vm5, %v662_v2, %v666_v36  ;;  %v277_v4 = vor.u32 %v276_v54, %v272_v53  ;;  %v1069_v5 = vrot.slane %v2939_v47, 5  ;;  %v87_v1 = vld [vmem:[#allocation2 + $0x114] sm:$0xf] }
  0x6a   :  { %v1072_v10 = vrot.slane %v2945_v52, 5  ;;  %v2405_v11 = vcombine.low %v657_v51, %v667_v3  ;;  %v268_v13 = vrot.slane %v267_v58, 4  ;;  %v1182_v14 = vsel %vm2786_vm2, %v2340_v57, %v1181_v59  ;;  %v3029_v57 = vld [vmem:[#allocation2 + $0x118] sm:$0xf] }
  0x6b   :  { %v1183_v15 = vrot.slane %v1181_v59, 4  ;;  %v278_v37 = vrot.slane %v277_v4, 4  ;;  %v1070_v19 = vsel %vm2786_vm2, %v2324_v62, %v1069_v5  ;;  %v1071_v20 = vrot.slane %v1069_v5, 4  ;;  %v3032_v5 = vld [vmem:[#allocation2 + $0x11c] sm:$0x1] }
  0x6c   :  { %v2341_v21 = vrot.slane %v929_v63, 9  ;;  %1529 = vrot.lane.b32.xlu1 %v2405_v11, %s2740_s20  ;;  %v273_v47 = vsel %vm2832_vm5, %v268_v13, %v272_v53  ;;  %v1188_v7 = vrot.slane %v2954_v12, 5  ;;  %v1191_v22 = vrot.slane %v2956_v18, 5 }
  0x6d   :  { %v1185_v52 = vsel %vm2786_vm2, %v1183_v15, %v1184_v61  ;;  %v283_v23 = vsel %vm2832_vm5, %v278_v37, %v282_v56  ;;  %v1073_v24 = vsel %vm2786_vm2, %v1071_v20, %v1072_v10  ;;  %v2325_v25 = vrot.slane %v913_v16, 9  ;;  %v55_v16 = vld [vmem:[#allocation2 + $0x54] sm:$0xf] }
  0x6e   :  { %v2436_v8 = vcombine.low %v1182_v14, %v1185_v52  ;;  %v2389_v29 = vcombine.low %v273_v47, %v283_v23  ;;  %v2420_v30 = vcombine.low %v1070_v19, %v1073_v24  ;;  %v1189_v12 = vsel %vm2786_vm2, %v2341_v21, %v1188_v7  ;;  %v3040_v47 = vld [vmem:[#allocation2 + $0x58] sm:$0xf] }
  0x6f   :  { %v1190_v55 = vrot.slane %v1188_v7, 4  ;;  %v1076_v18 = vrot.slane %v2966_v31, 5  ;;  %v1079_v6 = vrot.slane %v2970_v35, 5  ;;  %v669_v32 = vshrl.u32 %v85_v39, 16 }
  0x70   :  { %v672_v33 = vshll.u32 %v85_v39, 16  ;;  %1497 = vrot.lane.b32.xlu0 %v2389_v29, %s2740_s20  ;;  %1687 = vrot.lane.b32.xlu1 %v2436_v8, %s2742_s1  ;;  %v678_v17 = vshll.u32 %v3002_v26, 16  ;;  %v682_v36 = vshrl.u32 %v3002_v26, 16  ;;  %v688_v40 = vshll.u32 %v3004_v27, 16 }
  0x71   :  { %v1192_v9 = vsel %vm2786_vm2, %v1190_v55, %v1191_v22  ;;  %v1077_v35 = vsel %vm2786_vm2, %v2325_v25, %v1076_v18  ;;  %v1078_v28 = vrot.slane %v1076_v18, 4  ;;  %v671_v42 = vrot.slane %v669_v32, 4  ;;  %v3044_v25 = vld [vmem:[#allocation2 + $0x5c] sm:$0x1]  ;;  %v914_v32 = vld [vmem:[#allocation2 + $0x48] sm:$0xe] }
  0x72   :  { %v2437_v31 = vcombine.low %v1189_v12, %v1192_v9  ;;  %v674_v43 = vrot.slane %v672_v33, 5  ;;  %v680_v44 = vrot.slane %v678_v17, 5  ;;  %v684_v45 = vrot.slane %v682_v36, 4 }
  0x73   :  { %v690_v38 = vrot.slane %v688_v40, 5  ;;  %v1080_v48 = vsel %vm2786_vm2, %v1078_v28, %v1079_v6  ;;  %v285_v49 = vshrl.u32 %v53_v34, 16  ;;  %v288_v50 = vshll.u32 %v53_v34, 16  ;;  %v930_v6 = vld [vmem:[#allocation2 + $0x108] sm:$0xe] }
  0x74   :  { %v294_v51 = vshll.u32 %v3017_v41, 16  ;;  %1655 = vrot.lane.b32.xlu0 %v2420_v30, %s2742_s1  ;;  %1689 = vrot.lane.b32.xlu1 %v2437_v31, %s2742_s1  ;;  %v2421_v53 = vcombine.low %v1077_v35, %v1080_v48  ;;  %v675_v2 = vor.u32 %v674_v43, %v671_v42  ;;  %v685_v54 = vor.u32 %v684_v45, %v680_v44 }
  0x75   :  { %v298_v56 = vshrl.u32 %v3017_v41, 16  ;;  %v287_v58 = vrot.slane %v285_v49, 4  ;;  %v290_v59 = vrot.slane %v288_v50, 5  ;;  %v304_v62 = vshll.u32 %v3021_v46, 16  ;;  %v931_v50 = vld [vmem:[#allocation2 + $0x114] sm:$0xe] }
  0x76   :  { %v296_v61 = vrot.slane %v294_v51, 5  ;;  %v676_v63 = vrot.slane %v675_v2, 4  ;;  %v686_v3 = vrot.slane %v685_v54, 4  ;;  %v693_v10 = vshrl.u32 %v87_v1, 16 }
  0x77   :  { %v300_v4 = vrot.slane %v298_v56, 4  ;;  %v291_v11 = vor.u32 %v290_v59, %v287_v58  ;;  %v306_v13 = vrot.slane %v304_v62, 5  ;;  %v696_v14 = vshll.u32 %v87_v1, 16 }
  0x78   :  { %v702_v15 = vshll.u32 %v3029_v57, 16  ;;  %1657 = vrot.lane.b32.xlu0 %v2421_v53, %s2742_s1  ;;  %v681_v37 = vsel %vm2832_vm5, %v676_v63, %v680_v44  ;;  %v691_v19 = vsel %vm2832_vm5, %v686_v3, %v690_v38  ;;  %v695_v21 = vrot.slane %v693_v10, 4 }
  0x79   :  { %v301_v20 = vor.u32 %v300_v4, %v296_v61  ;;  %v2406_v52 = vcombine.low %v681_v37, %v691_v19  ;;  %v292_v7 = vrot.slane %v291_v11, 4  ;;  %v698_v22 = vrot.slane %v696_v14, 5 }
  0x7a   :  { %v704_v39 = vrot.slane %v702_v15, 5  ;;  %v706_v8 = vshrl.u32 %v3029_v57, 16  ;;  %v712_v24 = vshll.u32 %v3032_v5, 16  ;;  %v309_v29 = vshrl.u32 %v55_v16, 16 }
  0x7b   :  { %v302_v23 = vrot.slane %v301_v20, 4  ;;  %1531 = vrot.lane.b32.xlu1 %v2406_v52, %s2740_s20  ;;  %v297_v30 = vsel %vm2832_vm5, %v292_v7, %v296_v61  ;;  %v699_v12 = vor.u32 %v698_v22, %v695_v21  ;;  %v312_v55 = vshll.u32 %v55_v16, 16  ;;  %v89_v16 = vld [vmem:[#allocation2 + $0x120] sm:$0xf]  ;;  %v3076_v21 = vld [vmem:[#allocation2 + $0x124] sm:$0xf] }
  0x7c   :  { %v318_v18 = vshll.u32 %v3040_v47, 16  ;;  %v708_v34 = vrot.slane %v706_v8, 4  ;;  %v714_v9 = vrot.slane %v712_v24, 5  ;;  %v311_v17 = vrot.slane %v309_v29, 4 }
  0x7d   :  { %v307_v33 = vsel %vm2832_vm5, %v302_v23, %v306_v13  ;;  %v700_v40 = vrot.slane %v699_v12, 4  ;;  %v314_v31 = vrot.slane %v312_v55, 5  ;;  %v322_v42 = vshrl.u32 %v3040_v47, 16  ;;  %v57_v12 = vld [vmem:[#allocation2 + $0x60] sm:$0xf] }
  0x7e   :  { %v2390_v36 = vcombine.low %v297_v30, %v307_v33  ;;  %v320_v35 = vrot.slane %v318_v18, 5  ;;  %v709_v28 = vor.u32 %v708_v34, %v704_v39  ;;  %v328_v43 = vshll.u32 %v3044_v25, 16  ;;  %v3097_v33 = vld [vmem:[#allocation2 + $0x64] sm:$0xf]  ;;  %v3099_v34 = vld [vmem:[#allocation2 + $0x68] sm:$0x1] }
  0x7f   :  { %v2342_v44 = vrot.slane %v930_v6, 9  ;;  %v705_v45 = vsel %vm2832_vm5, %v700_v40, %v704_v39  ;;  %v315_v38 = vor.u32 %v314_v31, %v311_v17  ;;  %v1195_v48 = vrot.slane %v3002_v26, 5  ;;  %v3084_v39 = vld [vmem:[#allocation2 + $0x128] sm:$0x1]  ;;  %v91_v31 = vld [vmem:[#allocation2 + $0x12c] sm:$0xf] }
  0x80   :  { %1499 = vrot.lane.b32.xlu0 %v2390_v36, %s2740_s20  ;;  %v1198_v49 = vrot.slane %v3004_v27, 5  ;;  %v710_v51 = vrot.slane %v709_v28, 4  ;;  %v324_v1 = vrot.slane %v322_v42, 4  ;;  %v330_v53 = vrot.slane %v328_v43, 5  ;;  %v915_v27 = vld [vmem:[#allocation2 + $0x54] sm:$0xe] }
  0x81   :  { %v2326_v2 = vrot.slane %v914_v32, 9  ;;  %v316_v54 = vrot.slane %v315_v38, 4  ;;  %v1196_v56 = vsel %vm2786_vm2, %v2342_v44, %v1195_v48  ;;  %v1197_v58 = vrot.slane %v1195_v48, 4 }
  0x82   :  { %v1083_v59 = vrot.slane %v3017_v41, 5  ;;  %v715_v61 = vsel %vm2832_vm5, %v710_v51, %v714_v9  ;;  %v325_v62 = vor.u32 %v324_v1, %v320_v35  ;;  %v1086_v26 = vrot.slane %v3021_v46, 5  ;;  %v3106_v1 = vld [vmem:[#allocation2 + $0x130] sm:$0xf] }
  0x83   :  { %v2343_v63 = vrot.slane %v931_v50, 9  ;;  %v2407_v3 = vcombine.low %v705_v45, %v715_v61  ;;  %v321_v4 = vsel %vm2832_vm5, %v316_v54, %v320_v35  ;;  %v1199_v10 = vsel %vm2786_vm2, %v1197_v58, %v1198_v49 }
  0x84   :  { %v1084_v11 = vsel %vm2786_vm2, %v2326_v2, %v1083_v59  ;;  %v326_v13 = vrot.slane %v325_v62, 4  ;;  %v2438_v41 = vcombine.low %v1196_v56, %v1199_v10  ;;  %v1085_v14 = vrot.slane %v1083_v59, 4  ;;  %v3108_v59 = vld [vmem:[#allocation2 + $0x134] sm:$0x1] }
  0x85   :  { %v1202_v15 = vrot.slane %v3029_v57, 5  ;;  %1533 = vrot.lane.b32.xlu1 %v2407_v3, %s2740_s20  ;;  %v1205_v46 = vrot.slane %v3032_v5, 5  ;;  %v2327_v37 = vrot.slane %v915_v27, 9  ;;  %v1090_v19 = vrot.slane %v3040_v47, 5 }
  0x86   :  { %v1093_v20 = vrot.slane %v3044_v25, 5  ;;  %v331_v52 = vsel %vm2832_vm5, %v326_v13, %v330_v53  ;;  %v1087_v7 = vsel %vm2786_vm2, %v1085_v14, %v1086_v26  ;;  %v717_v25 = vshrl.u32 %v89_v16, 16 }
  0x87   :  { %v1203_v57 = vsel %vm2786_vm2, %v2343_v63, %v1202_v15  ;;  %v1204_v22 = vrot.slane %v1202_v15, 4  ;;  %v2391_v5 = vcombine.low %v321_v4, %v331_v52  ;;  %v2422_v23 = vcombine.low %v1084_v11, %v1087_v7  ;;  %v59_v11 = vld [vmem:[#allocation2 + $0x6c] sm:$0xf] }
  0x88   :  { %v1091_v47 = vsel %vm2786_vm2, %v2327_v37, %v1090_v19  ;;  %v1092_v8 = vrot.slane %v1090_v19, 4  ;;  %v720_v29 = vshll.u32 %v89_v16, 16  ;;  %v726_v30 = vshll.u32 %v3076_v21, 16  ;;  %v3118_v16 = vld [vmem:[#allocation2 + $0x70] sm:$0xf] }
  0x89   :  { %v1206_v24 = vsel %vm2786_vm2, %v1204_v22, %v1205_v46  ;;  %1501 = vrot.lane.b32.xlu0 %v2391_v5, %s2740_s20  ;;  %1691 = vrot.lane.b32.xlu1 %v2438_v41, %s2742_s1  ;;  %v730_v6 = vshrl.u32 %v3076_v21, 16  ;;  %v736_v32 = vshll.u32 %v3084_v39, 16  ;;  %v719_v17 = vrot.slane %v717_v25, 4  ;;  %v3122_v22 = vld [vmem:[#allocation2 + $0x74] sm:$0x1] }
  0x8a   :  { %v2439_v55 = vcombine.low %v1203_v57, %v1206_v24  ;;  %v1094_v18 = vsel %vm2786_vm2, %v1092_v8, %v1093_v20  ;;  %v722_v36 = vrot.slane %v720_v29, 5  ;;  %v728_v40 = vrot.slane %v726_v30, 5  ;;  %v932_v25 = vld [vmem:[#allocation2 + $0x120] sm:$0xe] }
  0x8b   :  { %v2423_v9 = vcombine.low %v1091_v47, %v1094_v18  ;;  %v732_v35 = vrot.slane %v730_v6, 4  ;;  %v738_v28 = vrot.slane %v736_v32, 5  ;;  %v333_v42 = vshrl.u32 %v57_v12, 16 }
  0x8c   :  { %v336_v43 = vshll.u32 %v57_v12, 16  ;;  %v723_v44 = vor.u32 %v722_v36, %v719_v17  ;;  %v342_v45 = vshll.u32 %v3097_v33, 16  ;;  %v346_v38 = vshrl.u32 %v3097_v33, 16 }
  0x8d   :  { %v352_v48 = vshll.u32 %v3099_v34, 16  ;;  %1659 = vrot.lane.b32.xlu0 %v2422_v23, %s2742_s1  ;;  %1693 = vrot.lane.b32.xlu1 %v2439_v55, %s2742_s1  ;;  %v733_v49 = vor.u32 %v732_v35, %v728_v40  ;;  %v335_v50 = vrot.slane %v333_v42, 4  ;;  %v741_v53 = vshrl.u32 %v91_v31, 16  ;;  %v916_v35 = vld [vmem:[#allocation2 + $0x60] sm:$0xe] }
  0x8e   :  { %v338_v51 = vrot.slane %v336_v43, 5  ;;  %v724_v2 = vrot.slane %v723_v44, 4  ;;  %v344_v54 = vrot.slane %v342_v45, 5  ;;  %v348_v56 = vrot.slane %v346_v38, 4  ;;  %v933_v45 = vld [vmem:[#allocation2 + $0x12c] sm:$0xe] }
  0x8f   :  { %v354_v58 = vrot.slane %v352_v48, 5  ;;  %v734_v61 = vrot.slane %v733_v49, 4  ;;  %v743_v26 = vrot.slane %v741_v53, 4  ;;  %v744_v63 = vshll.u32 %v91_v31, 16 }
  0x90   :  { %v339_v62 = vor.u32 %v338_v51, %v335_v50  ;;  %v729_v27 = vsel %vm2832_vm5, %v724_v2, %v728_v40  ;;  %v349_v3 = vor.u32 %v348_v56, %v344_v54  ;;  %v750_v4 = vshll.u32 %v3106_v1, 16 }
  0x91   :  { %v754_v10 = vshrl.u32 %v3106_v1, 16  ;;  %1661 = vrot.lane.b32.xlu0 %v2423_v9, %s2742_s1  ;;  %v739_v13 = vsel %vm2832_vm5, %v734_v61, %v738_v28  ;;  %v746_v14 = vrot.slane %v744_v63, 5  ;;  %v760_v15 = vshll.u32 %v3108_v59, 16  ;;  %v917_v61 = vld [vmem:[#allocation2 + $0x6c] sm:$0xe] }
  0x92   :  { %v340_v41 = vrot.slane %v339_v62, 4  ;;  %v2408_v46 = vcombine.low %v729_v27, %v739_v13  ;;  %v350_v37 = vrot.slane %v349_v3, 4  ;;  %v752_v19 = vrot.slane %v750_v4, 5  ;;  %v93_v27 = vld [vmem:[#allocation2 + $0x138] sm:$0xf] }
  0x93   :  { %v756_v20 = vrot.slane %v754_v10, 4  ;;  %v747_v7 = vor.u32 %v746_v14, %v743_v26  ;;  %v762_v57 = vrot.slane %v760_v15, 5  ;;  %v357_v5 = vshrl.u32 %v59_v11, 16  ;;  %v3157_v14 = vld [vmem:[#allocation2 + $0x13c] sm:$0xf] }
  0x94   :  { %v345_v52 = vsel %vm2832_vm5, %v340_v41, %v344_v54  ;;  %1535 = vrot.lane.b32.xlu1 %v2408_v46, %s2740_s20  ;;  %v355_v23 = vsel %vm2832_vm5, %v350_v37, %v354_v58  ;;  %v360_v8 = vshll.u32 %v59_v11, 16  ;;  %v366_v24 = vshll.u32 %v3118_v16, 16  ;;  %v3159_v15 = vld [vmem:[#allocation2 + $0x140] sm:$0x1] }
  0x95   :  { %v757_v47 = vor.u32 %v756_v20, %v752_v19  ;;  %v2392_v29 = vcombine.low %v345_v52, %v355_v23  ;;  %v748_v30 = vrot.slane %v747_v7, 4  ;;  %v359_v12 = vrot.slane %v357_v5, 4  ;;  %v3165_v20 = vld [vmem:[#allocation2 + $0x78] sm:$0xf]  ;;  %v3170_v5 = vld [vmem:[#allocation2 + $0x7c] sm:$0xf] }
  0x96   :  { %v370_v55 = vshrl.u32 %v3118_v16, 16  ;;  %v362_v6 = vrot.slane %v360_v8, 5  ;;  %v368_v32 = vrot.slane %v366_v24, 5  ;;  %v376_v9 = vshll.u32 %v3122_v22, 16  ;;  %3742 = vst [vmem:[#allocation11_spill] sm:$0xff] %v3165_v20  ;;  %3743 = vst [vmem:[#allocation12_spill] sm:$0xff] %v3170_v5 }
  0x97   :  { %v758_v18 = vrot.slane %v757_v47, 4  ;;  %1503 = vrot.lane.b32.xlu0 %v2392_v29, %s2740_s20  ;;  %v753_v17 = vsel %vm2832_vm5, %v748_v30, %v752_v19  ;;  %v2344_v40 = vrot.slane %v932_v25, 9  ;;  %v1209_v31 = vrot.slane %v3076_v21, 5  ;;  %v3175_v24 = vld [vmem:[#allocation2 + $0x80] sm:$0x1] }
  0x98   :  { %v372_v36 = vrot.slane %v370_v55, 4  ;;  %v363_v42 = vor.u32 %v362_v6, %v359_v12  ;;  %v378_v43 = vrot.slane %v376_v9, 5  ;;  %v1212_v44 = vrot.slane %v3084_v39, 5  ;;  %v3181_v55 = vld [vmem:[#allocation2 + $0x144] sm:$0xf] }
  0x99   :  { %v763_v28 = vsel %vm2832_vm5, %v758_v18, %v762_v57  ;;  %v1210_v49 = vsel %vm2786_vm2, %v2344_v40, %v1209_v31  ;;  %v1211_v50 = vrot.slane %v1209_v31, 4  ;;  %v2328_v53 = vrot.slane %v916_v35, 9  ;;  %3744 = vst [vmem:[#allocation13_spill] sm:$0xff] %v3181_v55 }
  0x9a   :  { %v2409_v38 = vcombine.low %v753_v17, %v763_v28  ;;  %v373_v48 = vor.u32 %v372_v36, %v368_v32  ;;  %v364_v51 = vrot.slane %v363_v42, 4  ;;  %v1097_v2 = vrot.slane %v3097_v33, 5 }
  0x9b   :  { %v1100_v21 = vrot.slane %v3099_v34, 5  ;;  %v1213_v56 = vsel %vm2786_vm2, %v1211_v50, %v1212_v44  ;;  %v2345_v39 = vrot.slane %v933_v45, 9  ;;  %v1216_v58 = vrot.slane %v3106_v1, 5 }
  0x9c   :  { %1537 = vrot.lane.b32.xlu1 %v2409_v38, %s2740_s20  ;;  %v374_v54 = vrot.slane %v373_v48, 4  ;;  %v369_v62 = vsel %vm2832_vm5, %v364_v51, %v368_v32  ;;  %v2440_v26 = vcombine.low %v1210_v49, %v1213_v56  ;;  %v1098_v63 = vsel %vm2786_vm2, %v2328_v53, %v1097_v2  ;;  %v3191_v49 = vld [vmem:[#allocation2 + $0x14c] sm:$0x1] }
  0x9d   :  { %v1099_v33 = vrot.slane %v1097_v2, 4  ;;  %v1217_v3 = vsel %vm2786_vm2, %v2345_v39, %v1216_v58  ;;  %v1218_v4 = vrot.slane %v1216_v58, 4  ;;  %v1219_v10 = vrot.slane %v3108_v59, 5 }
  0x9e   :  { %v379_v34 = vsel %vm2832_vm5, %v374_v54, %v378_v43  ;;  %v2329_v13 = vrot.slane %v917_v61, 9  ;;  %v1104_v41 = vrot.slane %v3118_v16, 5  ;;  %v1107_v19 = vrot.slane %v3122_v22, 5  ;;  %v3188_v43 = vld [vmem:[#allocation2 + $0x148] sm:$0xf] }
  0x9f   :  { %v2393_v1 = vcombine.low %v369_v62, %v379_v34  ;;  %v1101_v11 = vsel %vm2786_vm2, %v1099_v33, %v1100_v21  ;;  %v1220_v37 = vsel %vm2786_vm2, %v1218_v4, %v1219_v10  ;;  %v765_v59 = vshrl.u32 %v93_v27, 16  ;;  %3745 = vst [vmem:[#allocation14_spill] sm:$0xff] %v3188_v43  ;;  %v3198_v61 = vld [vmem:[#allocation2 + $0x84] sm:$0xf] }
  0xa0   :  { %1695 = vrot.lane.b32.xlu1 %v2440_v26, %s2742_s1  ;;  %v2424_v46 = vcombine.low %v1098_v63, %v1101_v11  ;;  %v2441_v52 = vcombine.low %v1217_v3, %v1220_v37  ;;  %v1105_v16 = vsel %vm2786_vm2, %v2329_v13, %v1104_v41  ;;  %v1106_v7 = vrot.slane %v1104_v41, 4  ;;  %3746 = vst [vmem:[#allocation15_spill] sm:$0xff] %v3198_v61  ;;  %v3210_v11 = vld [vmem:[#allocation2 + $0x8c] sm:$0x1] }
  0xa1   :  { %1505 = vrot.lane.b32.xlu0 %v2393_v1, %s2740_s20  ;;  %v768_v57 = vshll.u32 %v93_v27, 16  ;;  %v767_v23 = vrot.slane %v765_v59, 4  ;;  %v774_v47 = vshll.u32 %v3157_v14, 16  ;;  %v778_v8 = vshrl.u32 %v3157_v14, 16  ;;  %v3204_v27 = vld [vmem:[#allocation2 + $0x88] sm:$0xf]  ;;  %v3206_v34 = vpop.permute.xlu1 %1679 }
  0xa2   :  { %v784_v22 = vshll.u32 %v3159_v15, 16  ;;  %v1108_v25 = vsel %vm2786_vm2, %v1106_v7, %v1107_v19  ;;  %v381_v30 = vshrl.u32 %v3165_v20, 16  ;;  %v384_v12 = vshll.u32 %v3165_v20, 16  ;;  %3747 = vst [vmem:[#allocation16_spill] sm:$0xff] %v3204_v27  ;;  %v934_v7 = vld [vmem:[#allocation2 + $0x138] sm:$0xe] }
  0xa3   :  { %v770_v29 = vrot.slane %v768_v57, 5  ;;  %v2425_v18 = vcombine.low %v1105_v16, %v1108_v25  ;;  %v776_v6 = vrot.slane %v774_v47, 5  ;;  %v780_v32 = vrot.slane %v778_v8, 4  ;;  %v3220_v25 = vpop.permute.xlu0 %1647 }
  0xa4   :  { %1697 = vrot.lane.b32.xlu1 %v2441_v52, %s2742_s1  ;;  %v786_v9 = vrot.slane %v784_v22, 5  ;;  %v383_v36 = vrot.slane %v381_v30, 4  ;;  %v386_v40 = vrot.slane %v384_v12, 5  ;;  %v390_v31 = vshll.u32 %v3170_v5, 16  ;;  %v918_v22 = vld [vmem:[#allocation2 + $0x78] sm:$0xe] }
  0xa5   :  { %1663 = vrot.lane.b32.xlu0 %v2424_v46, %s2742_s1  ;;  %v771_v17 = vor.u32 %v770_v29, %v767_v23  ;;  %v781_v35 = vor.u32 %v780_v32, %v776_v6  ;;  %v394_v28 = vshrl.u32 %v3170_v5, 16  ;;  %v400_v42 = vshll.u32 %v3175_v24, 16 }
  0xa6   :  { %v789_v44 = vshrl.u32 %v3181_v55, 16  ;;  %v387_v38 = vor.u32 %v386_v40, %v383_v36  ;;  %v392_v48 = vrot.slane %v390_v31, 5  ;;  %v792_v50 = vshll.u32 %v3181_v55, 16  ;;  %v3224_v36 = vpop.permute.xlu1 %1681  ;;  %v3426_v55 = vld [vmem:[#allocation2 + $0xbc] sm:$0x1] }
  0xa7   :  { %v772_v45 = vrot.slane %v771_v17, 4  ;;  %v782_v51 = vrot.slane %v781_v35, 4  ;;  %v396_v53 = vrot.slane %v394_v28, 4  ;;  %v402_v2 = vrot.slane %v400_v42, 5  ;;  %v935_v42 = vld [vmem:[#allocation2 + $0x144] sm:$0xe] }
  0xa8   :  { %v791_v21 = vrot.slane %v789_v44, 4  ;;  %v388_v56 = vrot.slane %v387_v38, 4  ;;  %v794_v39 = vrot.slane %v792_v50, 5  ;;  %v798_v58 = vshll.u32 %v3188_v43, 16 }
  0xa9   :  { %1665 = vrot.lane.b32.xlu0 %v2425_v18, %s2742_s1  ;;  %v777_v54 = vsel %vm2832_vm5, %v772_v45, %v776_v6  ;;  %v787_v62 = vsel %vm2832_vm5, %v782_v51, %v786_v9  ;;  %v397_v26 = vor.u32 %v396_v53, %v392_v48  ;;  %v802_v63 = vshrl.u32 %v3188_v43, 16 }
  0xaa   :  { %v808_v33 = vshll.u32 %v3191_v49, 16  ;;  %v2410_v3 = vcombine.low %v777_v54, %v787_v62  ;;  %v393_v4 = vsel %vm2832_vm5, %v388_v56, %v392_v48  ;;  %v795_v10 = vor.u32 %v794_v39, %v791_v21  ;;  %v919_v21 = vld [vmem:[#allocation2 + $0x84] sm:$0xe]  ;;  %v3237_v39 = vpop.permute.xlu0 %1649 }
  0xab   :  { %v800_v1 = vrot.slane %v798_v58, 5  ;;  %v398_v13 = vrot.slane %v397_v26, 4  ;;  %v804_v41 = vrot.slane %v802_v63, 4  ;;  %v405_v37 = vshrl.u32 %v3198_v61, 16  ;;  %v3246_v63 = vld [vmem:[#allocation2 + $0x150] sm:$0xf] }
  0xac   :  { %v810_v46 = vrot.slane %v808_v33, 5  ;;  %1539 = vrot.lane.b32.xlu1 %v2410_v3, %s2740_s20  ;;  %v796_v19 = vrot.slane %v795_v10, 4  ;;  %v408_v59 = vshll.u32 %v3198_v61, 16  ;;  %v414_v52 = vshll.u32 %v3204_v27, 16 }
  0xad   :  { %v418_v16 = vshrl.u32 %v3204_v27, 16  ;;  %v403_v57 = vsel %vm2832_vm5, %v398_v13, %v402_v2  ;;  %v805_v23 = vor.u32 %v804_v41, %v800_v1  ;;  %v407_v47 = vrot.slane %v405_v37, 4  ;;  %v3254_v13 = vld [vmem:[#allocation2 + $0x158] sm:$0x1]  ;;  %v3256_v41 = vpop.permute.xlu1 %1489 }
  0xae   :  { %v424_v8 = vshll.u32 %v3210_v11, 16  ;;  %v2394_v29 = vcombine.low %v393_v4, %v403_v57  ;;  %v801_v30 = vsel %vm2832_vm5, %v796_v19, %v800_v1  ;;  %v410_v12 = vrot.slane %v408_v59, 5  ;;  %v3252_v1 = vld [vmem:[#allocation2 + $0x154] sm:$0xf]  ;;  %v3264_v57 = vld [vmem:[#allocation2 + $0x90] sm:$0xf] }
  0xaf   :  { %v416_v18 = vrot.slane %v414_v52, 5  ;;  %v806_v6 = vrot.slane %v805_v23, 4  ;;  %v420_v32 = vrot.slane %v418_v16, 4  ;;  %v2346_v17 = vrot.slane %v934_v7, 9 }
  0xb0   :  { %v426_v9 = vrot.slane %v424_v8, 5  ;;  %1507 = vrot.lane.b32.xlu0 %v2394_v29, %s2740_s20  ;;  %v411_v40 = vor.u32 %v410_v12, %v407_v47  ;;  %v1223_v31 = vrot.slane %v3157_v14, 5  ;;  %v1226_v35 = vrot.slane %v3159_v15, 5 }
  0xb1   :  { %v2330_v28 = vrot.slane %v918_v22, 9  ;;  %v811_v44 = vsel %vm2832_vm5, %v806_v6, %v810_v46  ;;  %v421_v45 = vor.u32 %v420_v32, %v416_v18  ;;  %v1111_v38 = vrot.slane %v3170_v5, 5  ;;  %v3277_v6 = vpop.permute.xlu0 %1487 }
  0xb2   :  { %v1114_v48 = vrot.slane %v3175_v24, 5  ;;  %v2411_v50 = vcombine.low %v801_v30, %v811_v44  ;;  %v412_v51 = vrot.slane %v411_v40, 4  ;;  %v1224_v53 = vsel %vm2786_vm2, %v2346_v17, %v1223_v31 }
  0xb3   :  { %v1225_v2 = vrot.slane %v1223_v31, 4  ;;  %v422_v14 = vrot.slane %v421_v45, 4  ;;  %v1112_v15 = vsel %vm2786_vm2, %v2330_v28, %v1111_v38  ;;  %v1113_v54 = vrot.slane %v1111_v38, 4  ;;  %v3279_v31 = vld [vmem:[#allocation2 + $0x98] sm:$0x1] }
  0xb4   :  { %v2347_v56 = vrot.slane %v935_v42, 9  ;;  %1541 = vrot.lane.b32.xlu1 %v2411_v50, %s2740_s20  ;;  %v417_v24 = vsel %vm2832_vm5, %v412_v51, %v416_v18  ;;  %v1230_v62 = vrot.slane %v3188_v43, 5  ;;  %v1233_v26 = vrot.slane %v3191_v49, 5  ;;  %v3286_v45 = vld [vmem:[#allocation2 + $0x15c] sm:$0xf] }
  0xb5   :  { %v1227_v58 = vsel %vm2786_vm2, %v1225_v2, %v1226_v35  ;;  %v427_v33 = vsel %vm2832_vm5, %v422_v14, %v426_v9  ;;  %v1115_v4 = vsel %vm2786_vm2, %v1113_v54, %v1114_v48  ;;  %v2331_v10 = vrot.slane %v919_v21, 9  ;;  %v3288_v38 = vpop.permute.xlu1 %1521  ;;  %v3293_v2 = vld [vmem:[#allocation2 + $0x160] sm:$0xf] }
  0xb6   :  { %v2442_v3 = vcombine.low %v1224_v53, %v1227_v58  ;;  %v2395_v46 = vcombine.low %v417_v24, %v427_v33  ;;  %v2426_v37 = vcombine.low %v1112_v15, %v1115_v4  ;;  %v1231_v49 = vsel %vm2786_vm2, %v2347_v56, %v1230_v62  ;;  %v2591_v43 = vld [vmem:[#allocation5] sm:$0x3f]  }
  0xb7   :  { %v1232_v19 = vrot.slane %v1230_v62, 4  ;;  %v1118_v59 = vrot.slane %v3204_v27, 5  ;;  %v1121_v52 = vrot.slane %v3210_v11, 5  ;;  %v813_v16 = vshrl.u32 %v3246_v63, 16  ;;  %v3273_v11 = vld [vmem:[#allocation2 + $0x94] sm:$0xf] }
  0xb8   :  { %v816_v7 = vshll.u32 %v3246_v63, 16  ;;  %1509 = vrot.lane.b32.xlu0 %v2395_v46, %s2740_s20  ;;  %1699 = vrot.lane.b32.xlu1 %v2442_v3, %s2742_s1  ;;  %v822_v47 = vshll.u32 %v3252_v1, 16  ;;  %v826_v8 = vshrl.u32 %v3252_v1, 16  ;;  %v832_v22 = vshll.u32 %v3254_v13, 16  ;;  %v3296_v62 = vld [vmem:[#allocation2 + $0x164] sm:$0x1] }
  0xb9   :  { %v1234_v23 = vsel %vm2786_vm2, %v1232_v19, %v1233_v26  ;;  %v1119_v30 = vsel %vm2786_vm2, %v2331_v10, %v1118_v59  ;;  %v1120_v12 = vrot.slane %v1118_v59, 4  ;;  %v815_v18 = vrot.slane %v813_v16, 4  ;;  %v3301_v46 = vld [vmem:[#allocation2 + $0x9c] sm:$0xf]  ;;  %v3310_v16 = vld [vmem:[#allocation2 + $0xa0] sm:$0xf] }
  0xba   :  { %v2443_v29 = vcombine.low %v1231_v49, %v1234_v23  ;;  %v818_v32 = vrot.slane %v816_v7, 5  ;;  %v824_v9 = vrot.slane %v822_v47, 5  ;;  %v828_v17 = vrot.slane %v826_v8, 4 }
  0xbb   :  { %v834_v40 = vrot.slane %v832_v22, 5  ;;  %v1122_v35 = vsel %vm2786_vm2, %v1120_v12, %v1121_v52  ;;  %v429_v28 = vshrl.u32 %v3264_v57, 16  ;;  %v432_v42 = vshll.u32 %v3264_v57, 16 }
  0xbc   :  { %v438_v44 = vshll.u32 %v3273_v11, 16  ;;  %1667 = vrot.lane.b32.xlu0 %v2426_v37, %s2742_s1  ;;  %1701 = vrot.lane.b32.xlu1 %v2443_v29, %s2742_s1  ;;  %v2427_v48 = vcombine.low %v1119_v30, %v1122_v35  ;;  %v819_v50 = vor.u32 %v818_v32, %v815_v18  ;;  %v829_v51 = vor.u32 %v828_v17, %v824_v9  ;;  %v3303_v37 = vpop.permute.xlu0 %1519  ;;  %v3320_v17 = vld [vmem:[#allocation2 + $0xa4] sm:$0x1] }
  0xbd   :  { %v442_v53 = vshrl.u32 %v3273_v11, 16  ;;  %v431_v21 = vrot.slane %v429_v28, 4  ;;  %v434_v14 = vrot.slane %v432_v42, 5  ;;  %v448_v54 = vshll.u32 %v3279_v31, 16  ;;  %v3312_v22 = vpop.permute.xlu1 %1523  ;;  %v936_v28 = vld [vmem:[#allocation2 + $0x150] sm:$0xe] }
  0xbe   :  { %v440_v15 = vrot.slane %v438_v44, 5  ;;  %v820_v56 = vrot.slane %v819_v50, 4  ;;  %v830_v24 = vrot.slane %v829_v51, 4  ;;  %v837_v26 = vshrl.u32 %v3286_v45, 16 }
  0xbf   :  { %v444_v58 = vrot.slane %v442_v53, 4  ;;  %v435_v33 = vor.u32 %v434_v14, %v431_v21  ;;  %v450_v3 = vrot.slane %v448_v54, 5  ;;  %v840_v4 = vshll.u32 %v3286_v45, 16  ;;  %v920_v54 = vld [vmem:[#allocation2 + $0x90] sm:$0xe] }
  0xc0   :  { %v846_v10 = vshll.u32 %v3293_v2, 16  ;;  %1669 = vrot.lane.b32.xlu0 %v2427_v48, %s2742_s1  ;;  %v825_v49 = vsel %vm2832_vm5, %v820_v56, %v824_v9  ;;  %v835_v19 = vsel %vm2832_vm5, %v830_v24, %v834_v40  ;;  %v839_v52 = vrot.slane %v837_v26, 4 }
  0xc1   :  { %v445_v59 = vor.u32 %v444_v58, %v440_v15  ;;  %v2412_v7 = vcombine.low %v825_v49, %v835_v19  ;;  %v436_v23 = vrot.slane %v435_v33, 4  ;;  %v842_v47 = vrot.slane %v840_v4, 5  ;;  %v937_v49 = vld [vmem:[#allocation2 + $0x15c] sm:$0xe] }
  0xc2   :  { %v848_v8 = vrot.slane %v846_v10, 5  ;;  %v850_v30 = vshrl.u32 %v3293_v2, 16  ;;  %v856_v12 = vshll.u32 %v3296_v62, 16  ;;  %v453_v18 = vshrl.u32 %v3301_v46, 16 }
  0xc3   :  { %v446_v29 = vrot.slane %v445_v59, 4  ;;  %1543 = vrot.lane.b32.xlu1 %v2412_v7, %s2740_s20  ;;  %v441_v32 = vsel %vm2832_vm5, %v436_v23, %v440_v15  ;;  %v843_v9 = vor.u32 %v842_v47, %v839_v52  ;;  %v456_v40 = vshll.u32 %v3301_v46, 16  ;;  %v3326_v15 = vpop.permute.xlu0 %1491 }
  0xc4   :  { %v462_v35 = vshll.u32 %v3310_v16, 16  ;;  %v852_v44 = vrot.slane %v850_v30, 4  ;;  %v858_v48 = vrot.slane %v856_v12, 5  ;;  %v455_v50 = vrot.slane %v453_v18, 4 }
  0xc5   :  { %v451_v42 = vsel %vm2832_vm5, %v446_v29, %v450_v3  ;;  %v844_v53 = vrot.slane %v843_v9, 4  ;;  %v458_v21 = vrot.slane %v456_v40, 5  ;;  %v466_v24 = vshrl.u32 %v3310_v16, 16  ;;  %v921_v9 = vld [vmem:[#allocation2 + $0x9c] sm:$0xe] }
  0xc6   :  { %v2396_v51 = vcombine.low %v441_v32, %v451_v42  ;;  %v464_v14 = vrot.slane %v462_v35, 5  ;;  %v853_v56 = vor.u32 %v852_v44, %v848_v8  ;;  %v472_v58 = vshll.u32 %v3320_v17, 16  ;;  %v3335_v19 = vpop.permute.xlu1 %1525 }
  0xc7   :  { %v2348_v26 = vrot.slane %v936_v28, 9  ;;  %v849_v33 = vsel %vm2832_vm5, %v844_v53, %v848_v8  ;;  %v459_v3 = vor.u32 %v458_v21, %v455_v50  ;;  %v1237_v4 = vrot.slane %v3252_v1, 5 }
  0xc8   :  { %1511 = vrot.lane.b32.xlu0 %v2396_v51, %s2740_s20  ;;  %v1240_v10 = vrot.slane %v3254_v13, 5  ;;  %v854_v59 = vrot.slane %v853_v56, 4  ;;  %v468_v52 = vrot.slane %v466_v24, 4  ;;  %v474_v7 = vrot.slane %v472_v58, 5  ;;  %v3358_v24 = vld [vmem:[#allocation2 + $0x16c] sm:$0xf] }
  0xc9   :  { %v2332_v23 = vrot.slane %v920_v54, 9  ;;  %v460_v47 = vrot.slane %v459_v3, 4  ;;  %v1238_v29 = vsel %vm2786_vm2, %v2348_v26, %v1237_v4  ;;  %v1239_v30 = vrot.slane %v1237_v4, 4 }
  0xca   :  { %v1125_v12 = vrot.slane %v3273_v11, 5  ;;  %v859_v8 = vsel %vm2832_vm5, %v854_v59, %v858_v48  ;;  %v469_v18 = vor.u32 %v468_v52, %v464_v14  ;;  %v1128_v13 = vrot.slane %v3279_v31, 5  ;;  %v3352_v31 = vld [vmem:[#allocation2 + $0x168] sm:$0xf]  ;;  %v3360_v58 = vpop.permute.xlu1 %1683 }
  0xcb   :  { %v2349_v32 = vrot.slane %v937_v49, 9  ;;  %v2413_v40 = vcombine.low %v849_v33, %v859_v8  ;;  %v465_v35 = vsel %vm2832_vm5, %v460_v47, %v464_v14  ;;  %v1241_v28 = vsel %vm2786_vm2, %v1239_v30, %v1240_v10  ;;  %v3349_v44 = vpop.permute.xlu0 %1493 }
  0xcc   :  { %v1126_v42 = vsel %vm2786_vm2, %v2332_v23, %v1125_v12  ;;  %v470_v50 = vrot.slane %v469_v18, 4  ;;  %v2444_v51 = vcombine.low %v1238_v29, %v1241_v28  ;;  %v1127_v48 = vrot.slane %v1125_v12, 4  ;;  %v3377_v29 = vld [vmem:[#allocation2 + $0xa8] sm:$0xf] }
  0xcd   :  { %v1244_v53 = vrot.slane %v3293_v2, 5  ;;  %1545 = vrot.lane.b32.xlu1 %v2413_v40, %s2740_s20  ;;  %v1247_v21 = vrot.slane %v3296_v62, 5  ;;  %v2333_v14 = vrot.slane %v921_v9, 9  ;;  %v1132_v54 = vrot.slane %v3310_v16, 5  ;;  %v3368_v62 = vld [vmem:[#allocation2 + $0x170] sm:$0x1] }
  0xce   :  { %v1135_v56 = vrot.slane %v3320_v17, 5  ;;  %v475_v26 = vsel %vm2832_vm5, %v470_v50, %v474_v7  ;;  %v1129_v33 = vsel %vm2786_vm2, %v1127_v48, %v1128_v13  ;;  %v861_v7 = vshrl.u32 %v3352_v31, 16  ;;  %v3385_v13 = vld [vmem:[#allocation2 + $0xac] sm:$0xf]  ;;  %v3391_v50 = vld [vmem:[#allocation2 + $0x174] sm:$0xf] }
  0xcf   :  { %v1245_v3 = vsel %vm2786_vm2, %v2349_v32, %v1244_v53  ;;  %v1246_v4 = vrot.slane %v1244_v53, 4  ;;  %v2397_v10 = vcombine.low %v465_v35, %v475_v26  ;;  %v2428_v49 = vcombine.low %v1126_v42, %v1129_v33  ;;  %v3387_v32 = vld [vmem:[#allocation2 + $0xb0] sm:$0x1]  ;;  %v3389_v9 = vpop.permute.xlu0 %1651 }
  0xd0   :  { %v1133_v17 = vsel %vm2786_vm2, %v2333_v14, %v1132_v54  ;;  %v1134_v59 = vrot.slane %v1132_v54, 4  ;;  %v864_v23 = vshll.u32 %v3352_v31, 16  ;;  %v870_v47 = vshll.u32 %v3358_v24, 16  ;;  %v3395_v14 = vpop.permute.xlu1 %1685 }
  0xd1   :  { %v1248_v52 = vsel %vm2786_vm2, %v1246_v4, %v1247_v21  ;;  %1513 = vrot.lane.b32.xlu0 %v2397_v10, %s2740_s20  ;;  %1703 = vrot.lane.b32.xlu1 %v2444_v51, %s2742_s1  ;;  %v874_v8 = vshrl.u32 %v3358_v24, 16  ;;  %v880_v18 = vshll.u32 %v3368_v62, 16  ;;  %v863_v35 = vrot.slane %v861_v7, 4 }
  0xd2   :  { %v2445_v30 = vcombine.low %v1245_v3, %v1248_v52  ;;  %v1136_v12 = vsel %vm2786_vm2, %v1134_v59, %v1135_v56  ;;  %v866_v28 = vrot.slane %v864_v23, 5  ;;  %v872_v42 = vrot.slane %v870_v47, 5 }
  0xd3   :  { %v2429_v40 = vcombine.low %v1133_v17, %v1136_v12  ;;  %v876_v51 = vrot.slane %v874_v8, 4  ;;  %v882_v48 = vrot.slane %v880_v18, 5  ;;  %v477_v53 = vshrl.u32 %v3377_v29, 16  ;;  %v3402_v17 = vld [vmem:[#allocation2 + $0x178] sm:$0xf] }
  0xd4   :  { %v480_v21 = vshll.u32 %v3377_v29, 16  ;;  %v867_v54 = vor.u32 %v866_v28, %v863_v35  ;;  %v486_v56 = vshll.u32 %v3385_v13, 16  ;;  %v490_v26 = vshrl.u32 %v3385_v13, 16  ;;  %v3405_v12 = vld [vmem:[#allocation2 + $0x17c] sm:$0x1]  ;;  %v3408_v28 = vpop.permute.xlu0 %1653 }
  0xd5   :  { %v496_v33 = vshll.u32 %v3387_v32, 16  ;;  %1671 = vrot.lane.b32.xlu0 %v2428_v49, %s2742_s1  ;;  %1705 = vrot.lane.b32.xlu1 %v2445_v30, %s2742_s1  ;;  %v877_v3 = vor.u32 %v876_v51, %v872_v42  ;;  %v479_v4 = vrot.slane %v477_v53, 4  ;;  %v885_v59 = vshrl.u32 %v3391_v50, 16 }
  0xd6   :  { %v482_v10 = vrot.slane %v480_v21, 5  ;;  %v868_v52 = vrot.slane %v867_v54, 4  ;;  %v488_v7 = vrot.slane %v486_v56, 5  ;;  %v492_v23 = vrot.slane %v490_v26, 4  ;;  %v3414_v54 = vld [vmem:[#allocation2 + $0xb4] sm:$0xf] }
  0xd7   :  { %v498_v47 = vrot.slane %v496_v33, 5  ;;  %v878_v8 = vrot.slane %v877_v3, 4  ;;  %v887_v35 = vrot.slane %v885_v59, 4  ;;  %v888_v49 = vshll.u32 %v3391_v50, 16 }
  0xd8   :  { %v483_v18 = vor.u32 %v482_v10, %v479_v4  ;;  %v873_v30 = vsel %vm2832_vm5, %v868_v52, %v872_v42  ;;  %v493_v51 = vor.u32 %v492_v23, %v488_v7  ;;  %v894_v53 = vshll.u32 %v3402_v17, 16  ;;  %v3420_v4 = vld [vmem:[#allocation2 + $0xb8] sm:$0xf]  ;;  %v3422_v10 = vpop.permute.xlu1 %1527 }
  0xd9   :  { %v898_v21 = vshrl.u32 %v3402_v17, 16  ;;  %1673 = vrot.lane.b32.xlu0 %v2429_v40, %s2742_s1  ;;  %v883_v56 = vsel %vm2832_vm5, %v878_v8, %v882_v48  ;;  %v890_v33 = vrot.slane %v888_v49, 5  ;;  %v904_v3 = vshll.u32 %v3405_v12, 16 }
  0xda   :  { %v484_v26 = vrot.slane %v483_v18, 4  ;;  %v2414_v42 = vcombine.low %v873_v30, %v883_v56  ;;  %v494_v59 = vrot.slane %v493_v51, 4  ;;  %v896_v52 = vrot.slane %v894_v53, 5  ;;  %v938_v51 = vld [vmem:[#allocation2 + $0x168] sm:$0xe]  ;;  %v3435_v56 = vpop.permute.xlu0 %1495 }
  0xdb   :  { %v900_v23 = vrot.slane %v898_v21, 4  ;;  %v891_v27 = vor.u32 %v890_v33, %v887_v35  ;;  %v906_v40 = vrot.slane %v904_v3, 5  ;;  %v501_v48 = vshrl.u32 %v3414_v54, 16 }
  0xdc   :  { %v489_v61 = vsel %vm2832_vm5, %v484_v26, %v488_v7  ;;  %1547 = vrot.lane.b32.xlu1 %v2414_v42, %s2740_s20  ;;  %v499_v8 = vsel %vm2832_vm5, %v494_v59, %v498_v47  ;;  %v504_v49 = vshll.u32 %v3414_v54, 16  ;;  %v510_v30 = vshll.u32 %v3420_v4, 16 }
  0xdd   :  { %v901_v18 = vor.u32 %v900_v23, %v896_v52  ;;  %v2398_v53 = vcombine.low %v489_v61, %v499_v8  ;;  %v892_v21 = vrot.slane %v891_v27, 4  ;;  %v503_v7 = vrot.slane %v501_v48, 4  ;;  %v922_v27 = vld [vmem:[#allocation2 + $0xa8] sm:$0xe] }
  0xde   :  { %v514_v35 = vshrl.u32 %v3420_v4, 16  ;;  %v506_v33 = vrot.slane %v504_v49, 5  ;;  %v512_v3 = vrot.slane %v510_v30, 5  ;;  %v520_v42 = vshll.u32 %v3426_v55, 16  ;;  %v3442_v48 = vpop.permute.xlu1 %1529 }
  0xdf   :  { %v902_v26 = vrot.slane %v901_v18, 4  ;;  %1515 = vrot.lane.b32.xlu0 %v2398_v53, %s2740_s20  ;;  %v897_v47 = vsel %vm2832_vm5, %v892_v21, %v896_v52  ;;  %v2350_v23 = vrot.slane %v938_v51, 9  ;;  %v1251_v61 = vrot.slane %v3358_v24, 5  ;;  %3748 = vst [vmem:[#allocation17_spill] sm:$0xff] %v3442_v48 }
  0xe0   :  { %v516_v59 = vrot.slane %v514_v35, 4  ;;  %v507_v18 = vor.u32 %v506_v33, %v503_v7  ;;  %v522_v49 = vrot.slane %v520_v42, 5  ;;  %v1254_v30 = vrot.slane %v3368_v62, 5  ;;  %v2624_v62 = vld [vmem:[#allocation2 + $0x10] sm:$0xf] }
  0xe1   :  { %v907_v8 = vsel %vm2832_vm5, %v902_v26, %v906_v40  ;;  %v1252_v52 = vsel %vm2786_vm2, %v2350_v23, %v1251_v61  ;;  %v1253_v21 = vrot.slane %v1251_v61, 4  ;;  %v2334_v35 = vrot.slane %v922_v27, 9  ;;  %v2625_v26 = vld [vmem:[#allocation2 + $0xc] sm:$0xf]  ;;  %v939_v42 = vld [vmem:[#allocation2 + $0x174] sm:$0xe] }
  0xe2   :  { %v2415_v20 = vcombine.low %v897_v47, %v907_v8  ;;  %v517_v53 = vor.u32 %v516_v59, %v512_v3  ;;  %v508_v51 = vrot.slane %v507_v18, 4  ;;  %v1139_v5 = vrot.slane %v3385_v13, 5  ;;  %v3454_v47 = vpop.permute.xlu0 %1497  ;;  %v2626_v27 = vld [vmem:[#allocation2 + $0x4] sm:$0xf]  ;;  %v2627_v8 = vld [vmem:[#allocation2] sm:$0xf] }
  0xe3   :  { %v1142_v48 = vrot.slane %v3387_v32, 5  ;;  %v1255_v7 = vsel %vm2786_vm2, %v1253_v21, %v1254_v30  ;;  %vm1945_vm6 = vcmask 1045504   ;;  %v2353_v33 = vcombine.low %v2625_v26, %v2624_v62 }
  0xe4   :  { %1549 = vrot.lane.b32.xlu1 %v2415_v20, %s2740_s20  ;;  %v518_v40 = vrot.slane %v517_v53, 4  ;;  %v513_v59 = vsel %vm2832_vm5, %v508_v51, %v512_v3  ;;  %v2446_v23 = vcombine.low %v1252_v52, %v1255_v7  ;;  %v1140_v32 = vsel %vm2786_vm2, %v2334_v35, %v1139_v5  ;;  %2582 = vmatprep.subr.msk.bf16.mxu0 %vm1945_vm6, %v2591_v43  ;;  %v923_v53 = vld [vmem:[#allocation2 + $0xb4] sm:$0xe]  ;;  %v3465_v3 = vpop.permute.xlu1 %1687 }
  0xe5   :  { %v1141_v61 = vrot.slane %v1139_v5, 4  ;;  %2583 = vmatprep.subr.msk.bf16.mxu1 %vm1945_vm6, %v2591_v43  ;;  %vm1711_vm7 = vcmask 31744   ;;  %v2352_v18 = vcombine.low %v2627_v8, %v2626_v27  ;;  %v1947_v30 = vsel %vm1945_vm6, %v2591_v43, 0  ;;  %v2632_v27 = vld [vmem:[#allocation2 + $0xd8] sm:$0xf] }
  0xe6   :  { %v523_v20 = vsel %vm2832_vm5, %v518_v40, %v522_v49  ;;  %v1717_v21 = vsel %vm1711_vm7, %v2353_v33, %v3256_v41  ;;  %2515 = vmatpush3.bf16.msra.mxu0 %v1947_v30  ;;  %v2351_v51 = vrot.slane %v939_v42, 9  ;;  %2581 = vmatpush3.bf16.msra.mxu1 %v1947_v30  ;;  %v1258_v43 = vrot.slane %v3402_v17, 5  ;;  %v2628_v42 = vld [vmem:[#allocation2 + $0xd0] sm:$0xf]  ;;  %v2633_v8 = vld [vmem:[#allocation2 + $0xdc] sm:$0xf] }
  0xe7   :  { %v2399_v52 = vcombine.low %v513_v59, %v523_v20  ;;  %v1143_v5 = vsel %vm2786_vm2, %v1141_v61, %v1142_v48  ;;  %v1714_v49 = vsel %vm1711_vm7, %v2352_v18, %v3277_v6  ;;  %v1261_v35 = vrot.slane %v3405_v12, 5  ;;  %v1656_v6 = vpop.permute.xlu0 %1655  ;;  %v2629_v59 = vld [vmem:[#allocation2 + $0xcc] sm:$0xf]  ;;  %v2631_v61 = vld [vmem:[#allocation2 + $0xc0] sm:$0xf] }
  0xe8   :  { %1707 = vrot.lane.b32.xlu1 %v2446_v23, %s2742_s1  ;;  %v2430_v60 = vcombine.low %v1140_v32, %v1143_v5  ;;  %v2335_v40 = vrot.slane %v923_v53, 9  ;;  %v1146_v48 = vrot.slane %v3420_v4, 5  ;;  %v1149_v41 = vrot.slane %v3426_v55, 5  ;;  %v2634_v30 = vld [vmem:[#allocation2 + $0x18] sm:$0xf]  ;;  %v3491_v5 = vpop.permute.xlu1 %1689 }
  0xe9   :  { %1517 = vrot.lane.b32.xlu0 %v2399_v52, %s2740_s20  ;;  %vm1808_vm8 = vcmask 64512   ;;  %v1259_v7 = vsel %vm2786_vm2, %v2351_v51, %v1258_v43  ;;  %v1260_v62 = vrot.slane %v1258_v43, 4  ;;  %vm1880_vm9 = vcmask 97280   ;;  %v2635_v53 = vld [vmem:[#allocation2 + $0x1c] sm:$0xf] }
  0xea   :  { %v1810_v26 = vsel %vm1808_vm8, %v1714_v49, %v3220_v25  ;;  %v1147_v12 = vsel %vm2786_vm2, %v2335_v40, %v1146_v48  ;;  %v1148_v33 = vrot.slane %v1146_v48, 4  ;;  %v2369_v23 = vcombine.low %v2629_v59, %v2628_v42  ;;  %v2630_v25 = vld [vmem:[#allocation2 + $0xc4] sm:$0xf]  ;;  %v2643_v42 = vld [vmem:[#allocation2 + $0xf4] sm:$0xf] }
  0xeb   :  { %2516 = vmatprep.mubr.msk.bf16.mxu0 %vm1880_vm9, %v1810_v26  ;;  %v1812_v55 = vsel %vm1808_vm8, %v1717_v21, %v3237_v39  ;;  %v1262_v32 = vsel %vm2786_vm2, %v1260_v62, %v1261_v35  ;;  %v2368_v20 = vcombine.low %v2631_v61, %v2630_v25  ;;  %v2370_v18 = vcombine.low %v2632_v27, %v2633_v8  ;;  %v2636_v48 = vld [vmem:[#allocation2 + $0x24] sm:$0xf]  ;;  %v2640_v26 = vld [vmem:[#allocation2 + $0x30] sm:$0xf] }
  0xec   :  { %2517 = vmatmul.mubr.msk.bf16.vlgmr.msra.gmra.mrb[0].mxu0 %vm1880_vm9, %v1812_v55  ;;  %v2354_v52 = vcombine.low %v2634_v30, %v2635_v53  ;;  %v2447_v51 = vcombine.low %v1259_v7, %v1262_v32  ;;  %v1150_v39 = vsel %vm2786_vm2, %v1148_v33, %v1149_v41  ;;  %v1765_v21 = vsel %vm1711_vm7, %v2369_v23, %v3288_v38  ;;  %v2637_v38 = vld [vmem:[#allocation2 + $0x28] sm:$0xf]  ;;  %v1658_v7 = vpop.permute.xlu0 %1657  ;;  %v2645_v32 = vld [vmem:[#allocation2 + $0x40] sm:$0xf] }
  0xed   :  { %1675 = vrot.lane.b32.xlu0 %v2430_v60, %s2742_s1  ;;  %v2431_v49 = vcombine.low %v1147_v12, %v1150_v39  ;;  %v1762_v43 = vsel %vm1711_vm7, %v2368_v20, %v3303_v37  ;;  %v1844_v35 = vsel %vm1808_vm8, %v1765_v21, %v3224_v36  ;;  %v1768_v60 = vsel %vm1711_vm7, %v2370_v18, %v3312_v22  ;;  %v2639_v22 = vld [vmem:[#allocation2 + $0xe8] sm:$0xf]  ;;  %v2641_v12 = vld [vmem:[#allocation2 + $0x34] sm:$0xf]  ;;  %v1532_v23 = vpop.permute.xlu1 %1531  ;;  %v2647_v18 = vld [vmem:[#allocation2 + $0x100] sm:$0xf] }
  0xee   :  { %1709 = vrot.lane.b32.xlu1 %v2447_v51, %s2742_s1  ;;  %v1842_v40 = vsel %vm1808_vm8, %v1762_v43, %v3206_v34  ;;  %v1720_v0 = vsel %vm1711_vm7, %v2354_v52, %v3326_v15  ;;  %v2355_v41 = vcombine.low %v2636_v48, %v2637_v38  ;;  %v1846_v37 = vsel %vm1808_vm8, %v1768_v60, %v3360_v58  ;;  %v2638_v34 = vld [vmem:[#allocation2 + $0xe4] sm:$0xf]  ;;  %v2648_v21 = vld [vmem:[#allocation2 + $0x108] sm:$0xf] }
  0xef   :  { %2548 = vmatprep.mubr.msk.bf16.mxu1 %vm1880_vm9, %v1842_v40  ;;  %v1814_v36 = vsel %vm1808_vm8, %v1720_v0, %v3389_v9  ;;  %v2371_v62 = vcombine.low %v2638_v34, %v2639_v22  ;;  %v2356_v33 = vcombine.low %v2640_v26, %v2641_v12  ;;  %v2642_v9 = vld [vmem:[#allocation2 + $0xf0] sm:$0xf]  ;;  %v2366_v39 = vcombine.low %v3377_v29, %v3385_v13  ;;  %v2650_v60 = vld [vmem:[#allocation2 + $0x48] sm:$0xf]  ;;  %v2651_v0 = vld [vmem:[#allocation2 + $0x4c] sm:$0xf] }
  0xf0   :  { %2549 = vmatmul.mubr.msk.bf16.vlgmr.msra.gmra.mrb[0].mxu1 %vm1880_vm9, %v1844_v35  ;;  %v1723_v15 = vsel %vm1711_vm7, %v2355_v41, %v3349_v44  ;;  %2520 = vmatprep.mubr.msk.bf16.mxu0 %vm1880_vm9, %v1814_v36  ;;  %v2372_v59 = vcombine.low %v2642_v9, %v2643_v42  ;;  %v2644_v44 = vld [vmem:[#allocation2 + $0x3c] sm:$0xf]  ;;  %v2383_v35 = vcombine.low %v3391_v50, %v3402_v17  ;;  %v2653_v26 = vld [vmem:[#allocation2 + $0x58] sm:$0xf] }
  0xf1   :  { %1677 = vrot.lane.b32.xlu0 %v2431_v49, %s2742_s1  ;;  %2552 = vmatprep.mubr.msk.bf16.mxu1 %vm1880_vm9, %v1846_v37  ;;  %v1816_v58 = vsel %vm1808_vm8, %v1723_v15, %v3408_v28  ;;  %v1726_v55 = vsel %vm1711_vm7, %v2356_v33, %v3435_v56  ;;  %v2357_v25 = vcombine.low %v2644_v44, %v2645_v32  ;;  %v2646_v56 = vld [vmem:[#allocation2 + $0xfc] sm:$0xf]  ;;  %v2649_v49 = vld [vmem:[#allocation2 + $0x10c] sm:$0xf]  ;;  %v2652_v15 = vld [vmem:[#allocation2 + $0x54] sm:$0xf] }
  0xf2   :  { %v1818_v61 = vsel %vm1808_vm8, %v1726_v55, %v1656_v6  ;;  %v1771_v20 = vsel %vm1711_vm7, %v2371_v62, %v3335_v19  ;;  %v1774_v27 = vsel %vm1711_vm7, %v2372_v59, %v3422_v10  ;;  %v1500_v8 = vpop.permute.xlu0 %1499  ;;  %v2373_v30 = vcombine.low %v2646_v56, %v2647_v18  ;;  %v3749_v37 = vld [vmem:[#allocation17_spill] sm:$0xff] }
  0xf3   :  { %v1848_v28 = vsel %vm1808_vm8, %v1771_v20, %v3395_v14  ;;  %v1850_v53 = vsel %vm1808_vm8, %v1774_v27, %v3465_v3  ;;  %v1729_v6 = vsel %vm1711_vm7, %v2357_v25, %v3454_v47  ;;  %v2380_v19 = vcombine.low %v3246_v63, %v3252_v1  ;;  %v2655_v9 = vld [vmem:[#allocation2 + $0x118] sm:$0xf]  ;;  %v2657_v27 = vld [vmem:[#allocation2 + $0x124] sm:$0xf] }
  0xf4   :  { %2521 = vmatmul.mubr.msk.bf16.gmra.mrb[4].mxu0 %vm1880_vm9, %v1816_v58  ;;  %v2364_v14 = vcombine.low %v3264_v57, %v3273_v11  ;;  %v2381_v10 = vcombine.low %v3286_v45, %v3293_v2  ;;  %v1820_v51 = vsel %vm1808_vm8, %v1729_v6, %v1658_v7  ;;  %v2365_v3 = vcombine.low %v3301_v46, %v3310_v16  ;;  %v2654_v58 = vld [vmem:[#allocation2 + $0x114] sm:$0xf] }
  0xf5   :  { %2524 = vmatprep.mubr.msk.bf16.mxu0 %vm1880_vm9, %v1818_v61  ;;  %v2382_v47 = vcombine.low %v3352_v31, %v3358_v24  ;;  %v2374_v43 = vcombine.low %v2648_v21, %v2649_v49  ;;  %v2367_v40 = vcombine.low %v3414_v54, %v3420_v4  ;;  %v2358_v48 = vcombine.low %v2650_v60, %v2651_v0  ;;  %v2661_v21 = vld [vmem:[#allocation2 + $0x64] sm:$0xf] }
  0xf6   :  { %v1777_v36 = vsel %vm1711_vm7, %v2373_v30, %v3749_v37  ;;  %v2359_v12 = vcombine.low %v2652_v15, %v2653_v26  ;;  %v2375_v42 = vcombine.low %v2654_v58, %v2655_v9  ;;  %v2658_v30 = vld [vmem:[#allocation2 + $0x12c] sm:$0xf]  ;;  %v2663_v37 = vld [vmem:[#allocation2 + $0x70] sm:$0xf]  ;;  %v2664_v58 = vld [vmem:[#allocation2 + $0x138] sm:$0xf] }
  0xf7   :  { %v1534_v52 = vpop.permute.xlu1 %1533  ;;  %v1852_v7 = vsel %vm1808_vm8, %v1777_v36, %v3491_v5  ;;  %v1780_v34 = vsel %vm1711_vm7, %v2374_v43, %v1532_v23  ;;  %v1732_v62 = vsel %vm1711_vm7, %v2358_v48, %v1500_v8  ;;  %v2665_v9 = vld [vmem:[#allocation2 + $0x13c] sm:$0xf] }
  0xf8   :  { %2553 = vmatmul.mubr.msk.bf16.gmra.mrb[4].mxu1 %vm1880_vm9, %v1848_v28  ;;  %v1783_v44 = vsel %vm1711_vm7, %v2375_v42, %v1534_v52  ;;  %v2656_v28 = vld [vmem:[#allocation2 + $0x120] sm:$0xf]  ;;  %v2378_v42 = vcombine.low %v2664_v58, %v2665_v9 }
  0xf9   :  { %2556 = vmatprep.mubr.msk.bf16.mxu1 %vm1880_vm9, %v1850_v53  ;;  %v2376_v8 = vcombine.low %v2656_v28, %v2657_v27  ;;  %v2659_v53 = vld [vmem:[#allocation2 + $0x130] sm:$0xf] }
  0xfa   :  { %v2377_v6 = vcombine.low %v2658_v30, %v2659_v53  ;;  %v3755_v30 = vld [vmem:[#allocation15_spill] sm:$0xff] }
  0xfb   :  { %v1502_v38 = vpop.permute.xlu0 %1501  ;;  %v1692_v41 = vpop.permute.xlu1 %1691 }
  0xfc   :  { %2525 = vmatmul.mubr.msk.bf16.gmra.mrb[8].mxu0 %vm1880_vm9, %v1820_v51  ;;  %v1854_v22 = vsel %vm1808_vm8, %v1780_v34, %v1692_v41  ;;  %v1735_v23 = vsel %vm1711_vm7, %v2359_v12, %v1502_v38  ;;  %v2660_v51 = vld [vmem:[#allocation2 + $0x60] sm:$0xf]  ;;  %v2662_v41 = vld [vmem:[#allocation2 + $0x6c] sm:$0xf] }
  0xfd   :  { %v2360_v49 = vcombine.low %v2660_v51, %v2661_v21  ;;  %v2361_v36 = vcombine.low %v2662_v41, %v2663_v37 }
  0xff   :  { %v1660_v33 = vpop.permute.xlu0 %1659  ;;  %v1694_v5 = vpop.permute.xlu1 %1693 }
 0x100   :  { %2557 = vmatmul.mubr.msk.bf16.gmra.mrb[8].mxu1 %vm1880_vm9, %v1852_v7  ;;  %v1822_v59 = vsel %vm1808_vm8, %v1732_v62, %v1660_v33  ;;  %v1856_v25 = vsel %vm1808_vm8, %v1783_v44, %v1694_v5 }
 0x101   :  { %2528 = vmatprep.mubr.msk.bf16.mxu0 %vm1880_vm9, %v1822_v59  ;;  %2560 = vmatprep.mubr.msk.bf16.mxu1 %vm1880_vm9, %v1854_v22 }
 0x103   :  { %v1662_v55 = vpop.permute.xlu0 %1661 }
 0x104   :  { %v1824_v32 = vsel %vm1808_vm8, %v1735_v23, %v1662_v55  ;;  %v3750_v23 = vld [vmem:[#allocation12_spill] sm:$0xff]  ;;  %v3751_v55 = vld [vmem:[#allocation11_spill] sm:$0xff] }
 0x105   :  { %2529 = vmatmul.mubr.msk.bf16.gmra.mrb[12].mxu0 %vm1880_vm9, %v1824_v32  ;;  %v2362_v44 = vcombine.low %v3751_v55, %v3750_v23  ;;  %v3752_v32 = vld [vmem:[#allocation14_spill] sm:$0xff] }
 0x106   :  { %v1536_v61 = vpop.permute.xlu1 %1535 }
 0x107   :  { %v1786_v18 = vsel %vm1711_vm7, %v2376_v8, %v1536_v61 }
 0x108   :  { %2561 = vmatmul.mubr.msk.bf16.gmra.mrb[12].mxu1 %vm1880_vm9, %v1856_v25  ;;  %v3753_v25 = vld [vmem:[#allocation13_spill] sm:$0xff] }
 0x109   :  { %v1504_v20 = vpop.permute.xlu0 %1503  ;;  %v2379_v61 = vcombine.low %v3753_v25, %v3752_v32 }
 0x10a   :  { %v1738_v38 = vsel %vm1711_vm7, %v2360_v49, %v1504_v20 }
 0x10e   :  { %v1538_v56 = vpop.permute.xlu1 %1537 }
 0x10f   :  { %v1789_v0 = vsel %vm1711_vm7, %v2377_v6, %v1538_v56 }
 0x112   :  { %v1696_v52 = vpop.permute.xlu1 %1695 }
 0x113   :  { %v1506_v43 = vpop.permute.xlu0 %1505  ;;  %v1858_v60 = vsel %vm1808_vm8, %v1786_v18, %v1696_v52  ;;  %v3754_v18 = vld [vmem:[#allocation16_spill] sm:$0xff] }
 0x114   :  { %2564 = vmatprep.mubr.msk.bf16.mxu1 %vm1880_vm9, %v1858_v60  ;;  %v1741_v62 = vsel %vm1711_vm7, %v2361_v36, %v1506_v43  ;;  %v2363_v53 = vcombine.low %v3755_v30, %v3754_v18 }
 0x116   :  { %v1698_v48 = vpop.permute.xlu1 %1697 }
 0x117   :  { %v1664_v7 = vpop.permute.xlu0 %1663  ;;  %v1860_v34 = vsel %vm1808_vm8, %v1789_v0, %v1698_v48 }
 0x118   :  { %v1826_v22 = vsel %vm1808_vm8, %v1738_v38, %v1664_v7  ;;  %2565 = vmatmul.mubr.msk.bf16.gmra.mrb[16].mxu1 %vm1880_vm9, %v1860_v34 }
 0x119   :  { %2532 = vmatprep.mubr.msk.bf16.mxu0 %vm1880_vm9, %v1826_v22 }
 0x11b   :  { %v1666_v15 = vpop.permute.xlu0 %1665 }
 0x11c   :  { %v1828_v26 = vsel %vm1808_vm8, %v1741_v62, %v1666_v15 }
 0x11d   :  { %2533 = vmatmul.mubr.msk.bf16.gmra.mrb[16].mxu0 %vm1880_vm9, %v1828_v26 }
 0x11e   :  { %v1540_v12 = vpop.permute.xlu1 %1539 }
 0x11f   :  { %v1792_v5 = vsel %vm1711_vm7, %v2378_v42, %v1540_v12 }
 0x122   :  { %v1508_v33 = vpop.permute.xlu0 %1507 }
 0x123   :  { %v1744_v8 = vsel %vm1711_vm7, %v2362_v44, %v1508_v33 }
 0x126   :  { %v1542_v59 = vpop.permute.xlu1 %1541 }
 0x127   :  { %v1795_v56 = vsel %vm1711_vm7, %v2379_v61, %v1542_v59 }
 0x12a   :  { %v1510_v20 = vpop.permute.xlu0 %1509  ;;  %v1700_v28 = vpop.permute.xlu1 %1699 }
 0x12b   :  { %v1862_v27 = vsel %vm1808_vm8, %v1792_v5, %v1700_v28  ;;  %v1747_v49 = vsel %vm1711_vm7, %v2363_v53, %v1510_v20 }
 0x12c   :  { %2568 = vmatprep.mubr.msk.bf16.mxu1 %vm1880_vm9, %v1862_v27 }
 0x12e   :  { %v1668_v6 = vpop.permute.xlu0 %1667  ;;  %v1702_v52 = vpop.permute.xlu1 %1701 }
 0x12f   :  { %v1830_v51 = vsel %vm1808_vm8, %v1744_v8, %v1668_v6  ;;  %v1864_v21 = vsel %vm1808_vm8, %v1795_v56, %v1702_v52 }
 0x130   :  { %2536 = vmatprep.mubr.msk.bf16.mxu0 %vm1880_vm9, %v1830_v51  ;;  %2569 = vmatmul.mubr.msk.bf16.gmra.mrb[20].mxu1 %vm1880_vm9, %v1864_v21 }
 0x132   :  { %v1670_v43 = vpop.permute.xlu0 %1669 }
 0x133   :  { %v1832_v60 = vsel %vm1808_vm8, %v1747_v49, %v1670_v43 }
 0x134   :  { %2537 = vmatmul.mubr.msk.bf16.gmra.mrb[20].mxu0 %vm1880_vm9, %v1832_v60 }
 0x135   :  { %v1544_v0 = vpop.permute.xlu1 %1543 }
 0x136   :  { %v1798_v41 = vsel %vm1711_vm7, %v2380_v19, %v1544_v0 }
 0x13a   :  { %v1512_v48 = vpop.permute.xlu0 %1511 }
 0x13b   :  { %v1750_v34 = vsel %vm1711_vm7, %v2364_v14, %v1512_v48 }
 0x13f   :  { %v1546_v38 = vpop.permute.xlu1 %1545 }
 0x140   :  { %v1801_v22 = vsel %vm1711_vm7, %v2381_v10, %v1546_v38 }
 0x143   :  { %v1514_v37 = vpop.permute.xlu0 %1513  ;;  %v1704_v36 = vpop.permute.xlu1 %1703 }
 0x144   :  { %v1866_v7 = vsel %vm1808_vm8, %v1798_v41, %v1704_v36  ;;  %v1753_v57 = vsel %vm1711_vm7, %v2365_v3, %v1514_v37 }
 0x145   :  { %2572 = vmatprep.mubr.msk.bf16.mxu1 %vm1880_vm9, %v1866_v7 }
 0x147   :  { %v1672_v62 = vpop.permute.xlu0 %1671  ;;  %v1706_v63 = vpop.permute.xlu1 %1705 }
 0x148   :  { %v1834_v1 = vsel %vm1808_vm8, %v1750_v34, %v1672_v62  ;;  %v1868_v19 = vsel %vm1808_vm8, %v1801_v22, %v1706_v63 }
 0x149   :  { %2540 = vmatprep.mubr.msk.bf16.mxu0 %vm1880_vm9, %v1834_v1  ;;  %2573 = vmatmul.mubr.msk.bf16.gmra.mrb[24].mxu1 %vm1880_vm9, %v1868_v19 }
 0x14b   :  { %v1674_v11 = vpop.permute.xlu0 %1673 }
 0x14c   :  { %v1836_v45 = vsel %vm1808_vm8, %v1753_v57, %v1674_v11 }
 0x14d   :  { %2541 = vmatmul.mubr.msk.bf16.gmra.mrb[24].mxu0 %vm1880_vm9, %v1836_v45 }
 0x14e   :  { %v1548_v2 = vpop.permute.xlu1 %1547 }
 0x14f   :  { %v1804_v15 = vsel %vm1711_vm7, %v2382_v47, %v1548_v2 }
 0x151   :  { %v1516_v14 = vpop.permute.xlu0 %1515 }
 0x152   :  { %v1756_v46 = vsel %vm1711_vm7, %v2366_v39, %v1516_v14 }
 0x156   :  { %v1550_v10 = vpop.permute.xlu1 %1549 }
 0x157   :  { %v1807_v31 = vsel %vm1711_vm7, %v2383_v35, %v1550_v10 }
 0x15a   :  { %v1708_v26 = vpop.permute.xlu1 %1707 }
 0x15b   :  { %v1518_v12 = vpop.permute.xlu0 %1517  ;;  %v1870_v33 = vsel %vm1808_vm8, %v1804_v15, %v1708_v26 }
 0x15c   :  { %2576 = vmatprep.mubr.msk.bf16.mxu1 %vm1880_vm9, %v1870_v33  ;;  %v1759_v29 = vsel %vm1711_vm7, %v2367_v40, %v1518_v12 }
 0x15f   :  { %v1676_v16 = vpop.permute.xlu0 %1675 }
 0x160   :  { %v1838_v3 = vsel %vm1808_vm8, %v1756_v46, %v1676_v16  ;;  %v1710_v24 = vpop.permute.xlu1 %1709 }
 0x161   :  { %2544 = vmatprep.mubr.msk.bf16.mxu0 %vm1880_vm9, %v1838_v3  ;;  %v1872_v47 = vsel %vm1808_vm8, %v1807_v31, %v1710_v24 }
 0x162   :  { %2577 = vmatmul.mubr.msk.bf16.gmra.mrb[28].mxu1 %vm1880_vm9, %v1872_v47 }
 0x163   :  { %v1678_v13 = vpop.permute.xlu0 %1677 }
 0x164   :  { %v1840_v39 = vsel %vm1808_vm8, %v1759_v29, %v1678_v13 }
 0x165   :  { %2545 = vmatmul.mubr.msk.bf16.gmra.mrb[28].mxu0 %vm1880_vm9, %v1840_v39 }
 0x1bf   :  { %v2518_v50 = vpop.f32.mrb[0].mxu0 }
 0x1c0   :  { %2240 = vst.msk [vmem:[#allocation7 + $0x10] sm:$0xff] %vm1808_vm8, %v2518_v50  ;;  %v1983_v17 = vpop.f32.mrb[1].mxu0 }
 0x1c1   :  { %2238 = vst.msk [vmem:[#allocation7] sm:$0xff] %vm1808_vm8, %v1983_v17  ;;  %v2519_v35 = vpop.f32.mrb[2].mxu0 }
 0x1c2   :  { %2241 = vst.msk [vmem:[#allocation7 + $0x18] sm:$0xff] %vm1808_vm8, %v2519_v35  ;;  %v1986_v58 = vpop.f32.mrb[3].mxu0 }
 0x1c3   :  { %2239 = vst.msk [vmem:[#allocation7 + $0x8] sm:$0xff] %vm1808_vm8, %v1986_v58  ;;  %v2550_v54 = vpop.f32.mrb[0].mxu1 }
 0x1c4   :  { %2272 = vst.msk [vmem:[#allocation7 + $0x110] sm:$0xff] %vm1808_vm8, %v2550_v54  ;;  %v2111_v4 = vpop.f32.mrb[1].mxu1 }
 0x1c5   :  { %2270 = vst.msk [vmem:[#allocation7 + $0x100] sm:$0xff] %vm1808_vm8, %v2111_v4  ;;  %v2551_v40 = vpop.f32.mrb[2].mxu1 }
 0x1c6   :  { %2273 = vst.msk [vmem:[#allocation7 + $0x118] sm:$0xff] %vm1808_vm8, %v2551_v40  ;;  %v2114_v9 = vpop.f32.mrb[3].mxu1 }
 0x1c7   :  { %v2522_v42 = vpop.f32.mrb[4].mxu0  ;;  %2271 = vst.msk [vmem:[#allocation7 + $0x108] sm:$0xff] %vm1808_vm8, %v2114_v9 }
 0x1c8   :  { %2244 = vst.msk [vmem:[#allocation7 + $0x30] sm:$0xff] %vm1808_vm8, %v2522_v42  ;;  %v1999_v59 = vpop.f32.mrb[5].mxu0 }
 0x1c9   :  { %2242 = vst.msk [vmem:[#allocation7 + $0x20] sm:$0xff] %vm1808_vm8, %v1999_v59  ;;  %v2523_v5 = vpop.f32.mrb[6].mxu0 }
 0x1ca   :  { %2245 = vst.msk [vmem:[#allocation7 + $0x38] sm:$0xff] %vm1808_vm8, %v2523_v5  ;;  %v2002_v23 = vpop.f32.mrb[7].mxu0 }
 0x1cb   :  { %2243 = vst.msk [vmem:[#allocation7 + $0x28] sm:$0xff] %vm1808_vm8, %v2002_v23  ;;  %v2554_v55 = vpop.f32.mrb[4].mxu1 }
 0x1cc   :  { %2276 = vst.msk [vmem:[#allocation7 + $0x130] sm:$0xff] %vm1808_vm8, %v2554_v55  ;;  %v2127_v44 = vpop.f32.mrb[5].mxu1 }
 0x1cd   :  { %2274 = vst.msk [vmem:[#allocation7 + $0x120] sm:$0xff] %vm1808_vm8, %v2127_v44  ;;  %v2555_v32 = vpop.f32.mrb[6].mxu1 }
 0x1ce   :  { %2277 = vst.msk [vmem:[#allocation7 + $0x138] sm:$0xff] %vm1808_vm8, %v2555_v32  ;;  %v2130_v25 = vpop.f32.mrb[7].mxu1 }
 0x1cf   :  { %v2526_v61 = vpop.f32.mrb[8].mxu0  ;;  %2275 = vst.msk [vmem:[#allocation7 + $0x128] sm:$0xff] %vm1808_vm8, %v2130_v25 }
 0x1d0   :  { %2248 = vst.msk [vmem:[#allocation7 + $0x50] sm:$0xff] %vm1808_vm8, %v2526_v61  ;;  %v2015_v20 = vpop.f32.mrb[9].mxu0 }
 0x1d1   :  { %2246 = vst.msk [vmem:[#allocation7 + $0x40] sm:$0xff] %vm1808_vm8, %v2015_v20  ;;  %v2527_v28 = vpop.f32.mrb[10].mxu0 }
 0x1d2   :  { %2249 = vst.msk [vmem:[#allocation7 + $0x58] sm:$0xff] %vm1808_vm8, %v2527_v28  ;;  %v2018_v27 = vpop.f32.mrb[11].mxu0 }
 0x1d3   :  { %2247 = vst.msk [vmem:[#allocation7 + $0x48] sm:$0xff] %vm1808_vm8, %v2018_v27  ;;  %v2558_v8 = vpop.f32.mrb[8].mxu1 }
 0x1d4   :  { %2280 = vst.msk [vmem:[#allocation7 + $0x150] sm:$0xff] %vm1808_vm8, %v2558_v8  ;;  %v2143_v56 = vpop.f32.mrb[9].mxu1 }
 0x1d5   :  { %2278 = vst.msk [vmem:[#allocation7 + $0x140] sm:$0xff] %vm1808_vm8, %v2143_v56  ;;  %v2559_v18 = vpop.f32.mrb[10].mxu1 }
 0x1d6   :  { %2281 = vst.msk [vmem:[#allocation7 + $0x158] sm:$0xff] %vm1808_vm8, %v2559_v18  ;;  %v2146_v30 = vpop.f32.mrb[11].mxu1 }
 0x1d7   :  { %2279 = vst.msk [vmem:[#allocation7 + $0x148] sm:$0xff] %vm1808_vm8, %v2146_v30 }
 0x1d8   :  { %v2530_v53 = vpop.f32.mrb[12].mxu0 }
 0x1d9   :  { %2252 = vst.msk [vmem:[#allocation7 + $0x70] sm:$0xff] %vm1808_vm8, %v2530_v53  ;;  %v2031_v6 = vpop.f32.mrb[13].mxu0 }
 0x1da   :  { %2250 = vst.msk [vmem:[#allocation7 + $0x60] sm:$0xff] %vm1808_vm8, %v2031_v6  ;;  %v2531_v52 = vpop.f32.mrb[14].mxu0 }
 0x1db   :  { %v2562_v51 = vpop.f32.mrb[12].mxu1  ;;  %2253 = vst.msk [vmem:[#allocation7 + $0x78] sm:$0xff] %vm1808_vm8, %v2531_v52  ;;  %v2034_v21 = vpop.f32.mrb[15].mxu0 }
 0x1dc   :  { %2284 = vst.msk [vmem:[#allocation7 + $0x170] sm:$0xff] %vm1808_vm8, %v2562_v51  ;;  %v2159_v49 = vpop.f32.mrb[13].mxu1  ;;  %2251 = vst.msk [vmem:[#allocation7 + $0x68] sm:$0xff] %vm1808_vm8, %v2034_v21 }
 0x1dd   :  { %2282 = vst.msk [vmem:[#allocation7 + $0x160] sm:$0xff] %vm1808_vm8, %v2159_v49  ;;  %v2563_v43 = vpop.f32.mrb[14].mxu1 }
 0x1de   :  { %2285 = vst.msk [vmem:[#allocation7 + $0x178] sm:$0xff] %vm1808_vm8, %v2563_v43  ;;  %v2162_v60 = vpop.f32.mrb[15].mxu1 }
 0x1df   :  { %2283 = vst.msk [vmem:[#allocation7 + $0x168] sm:$0xff] %vm1808_vm8, %v2162_v60 }
 0x1eb   :  { %v2566_v0 = vpop.f32.mrb[16].mxu1 }
 0x1ec   :  { %2288 = vst.msk [vmem:[#allocation7 + $0x190] sm:$0xff] %vm1808_vm8, %v2566_v0  ;;  %v2175_v48 = vpop.f32.mrb[17].mxu1 }
 0x1ed   :  { %2286 = vst.msk [vmem:[#allocation7 + $0x180] sm:$0xff] %vm1808_vm8, %v2175_v48  ;;  %v2567_v38 = vpop.f32.mrb[18].mxu1 }
 0x1ee   :  { %2289 = vst.msk [vmem:[#allocation7 + $0x198] sm:$0xff] %vm1808_vm8, %v2567_v38  ;;  %v2178_v41 = vpop.f32.mrb[19].mxu1 }
 0x1ef   :  { %2287 = vst.msk [vmem:[#allocation7 + $0x188] sm:$0xff] %vm1808_vm8, %v2178_v41 }
 0x1f0   :  { %v2534_v37 = vpop.f32.mrb[16].mxu0 }
 0x1f1   :  { %2256 = vst.msk [vmem:[#allocation7 + $0x90] sm:$0xff] %vm1808_vm8, %v2534_v37  ;;  %v2047_v36 = vpop.f32.mrb[17].mxu0 }
 0x1f2   :  { %2254 = vst.msk [vmem:[#allocation7 + $0x80] sm:$0xff] %vm1808_vm8, %v2047_v36  ;;  %v2535_v7 = vpop.f32.mrb[18].mxu0 }
 0x1f3   :  { %2257 = vst.msk [vmem:[#allocation7 + $0x98] sm:$0xff] %vm1808_vm8, %v2535_v7  ;;  %v2050_v34 = vpop.f32.mrb[19].mxu0 }
 0x1f4   :  { %2255 = vst.msk [vmem:[#allocation7 + $0x88] sm:$0xff] %vm1808_vm8, %v2050_v34 }
 0x203   :  { %v2570_v22 = vpop.f32.mrb[20].mxu1 }
 0x204   :  { %2292 = vst.msk [vmem:[#allocation7 + $0x1b0] sm:$0xff] %vm1808_vm8, %v2570_v22  ;;  %v2191_v62 = vpop.f32.mrb[21].mxu1 }
 0x205   :  { %2290 = vst.msk [vmem:[#allocation7 + $0x1a0] sm:$0xff] %vm1808_vm8, %v2191_v62  ;;  %v2571_v63 = vpop.f32.mrb[22].mxu1 }
 0x206   :  { %2293 = vst.msk [vmem:[#allocation7 + $0x1b8] sm:$0xff] %vm1808_vm8, %v2571_v63  ;;  %v2194_v1 = vpop.f32.mrb[23].mxu1 }
 0x207   :  { %v2538_v19 = vpop.f32.mrb[20].mxu0  ;;  %2291 = vst.msk [vmem:[#allocation7 + $0x1a8] sm:$0xff] %vm1808_vm8, %v2194_v1 }
 0x208   :  { %2260 = vst.msk [vmem:[#allocation7 + $0xb0] sm:$0xff] %vm1808_vm8, %v2538_v19  ;;  %v2063_v57 = vpop.f32.mrb[21].mxu0 }
 0x209   :  { %2258 = vst.msk [vmem:[#allocation7 + $0xa0] sm:$0xff] %vm1808_vm8, %v2063_v57  ;;  %v2539_v11 = vpop.f32.mrb[22].mxu0 }
 0x20a   :  { %2261 = vst.msk [vmem:[#allocation7 + $0xb8] sm:$0xff] %vm1808_vm8, %v2539_v11  ;;  %v2066_v45 = vpop.f32.mrb[23].mxu0 }
 0x20b   :  { %2259 = vst.msk [vmem:[#allocation7 + $0xa8] sm:$0xff] %vm1808_vm8, %v2066_v45 }
 0x21c   :  { %v2574_v2 = vpop.f32.mrb[24].mxu1 }
 0x21d   :  { %2296 = vst.msk [vmem:[#allocation7 + $0x1d0] sm:$0xff] %vm1808_vm8, %v2574_v2  ;;  %v2207_v14 = vpop.f32.mrb[25].mxu1 }
 0x21e   :  { %2294 = vst.msk [vmem:[#allocation7 + $0x1c0] sm:$0xff] %vm1808_vm8, %v2207_v14  ;;  %v2575_v10 = vpop.f32.mrb[26].mxu1 }
 0x21f   :  { %2297 = vst.msk [vmem:[#allocation7 + $0x1d8] sm:$0xff] %vm1808_vm8, %v2575_v10  ;;  %v2210_v15 = vpop.f32.mrb[27].mxu1 }
 0x220   :  { %v2542_v26 = vpop.f32.mrb[24].mxu0  ;;  %2295 = vst.msk [vmem:[#allocation7 + $0x1c8] sm:$0xff] %vm1808_vm8, %v2210_v15 }
 0x221   :  { %2264 = vst.msk [vmem:[#allocation7 + $0xd0] sm:$0xff] %vm1808_vm8, %v2542_v26  ;;  %v2079_v12 = vpop.f32.mrb[25].mxu0 }
 0x222   :  { %2262 = vst.msk [vmem:[#allocation7 + $0xc0] sm:$0xff] %vm1808_vm8, %v2079_v12  ;;  %v2543_v33 = vpop.f32.mrb[26].mxu0 }
 0x223   :  { %2265 = vst.msk [vmem:[#allocation7 + $0xd8] sm:$0xff] %vm1808_vm8, %v2543_v33  ;;  %v2082_v46 = vpop.f32.mrb[27].mxu0 }
 0x224   :  { %2263 = vst.msk [vmem:[#allocation7 + $0xc8] sm:$0xff] %vm1808_vm8, %v2082_v46 }
 0x235   :  { %v2578_v16 = vpop.f32.mrb[28].mxu1 }
 0x236   :  { %2300 = vst.msk [vmem:[#allocation7 + $0x1f0] sm:$0xff] %vm1808_vm8, %v2578_v16  ;;  %v2223_v3 = vpop.f32.mrb[29].mxu1 }
 0x237   :  { %2298 = vst.msk [vmem:[#allocation7 + $0x1e0] sm:$0xff] %vm1808_vm8, %v2223_v3  ;;  %v2579_v24 = vpop.f32.mrb[30].mxu1 }
 0x238   :  { %v2546_v31 = vpop.f32.mrb[28].mxu0  ;;  %2301 = vst.msk [vmem:[#allocation7 + $0x1f8] sm:$0xff] %vm1808_vm8, %v2579_v24  ;;  %v2226_v29 = vpop.f32.mrb[31].mxu1 }
 0x239   :  { %2268 = vst.msk [vmem:[#allocation7 + $0xf0] sm:$0xff] %vm1808_vm8, %v2546_v31  ;;  %v2095_v47 = vpop.f32.mrb[29].mxu0  ;;  %2299 = vst.msk [vmem:[#allocation7 + $0x1e8] sm:$0xff] %vm1808_vm8, %v2226_v29 }
 0x23a   :  { %2266 = vst.msk [vmem:[#allocation7 + $0xe0] sm:$0xff] %vm1808_vm8, %v2095_v47  ;;  %v2547_v13 = vpop.f32.mrb[30].mxu0 }
 0x23b   :  { %2269 = vst.msk [vmem:[#allocation7 + $0xf8] sm:$0xff] %vm1808_vm8, %v2547_v13  ;;  %v2098_v39 = vpop.f32.mrb[31].mxu0 }
 0x23c   :  { %2267 = vst.msk [vmem:[#allocation7 + $0xe8] sm:$0xff] %vm1808_vm8, %v2098_v39 }
 0x23d   :  { %2721 = shalt.err (!%p2718_p6)
}
 0x23e   :  { %s2722_s11 = scalar_lea.hbm %s3731_s2, 8192 }
 0x23f   :  { %p2723_p7 = scmp.ne.s32.totalorder %s3731_s2, %s2722_s11  ;;  %p2726_p8 = scmp.lt.u32.totalorder %s2722_s11, %s3731_s2 }
 0x241   :  { %p2728_p9 = pnand %p2726_p8, %p2723_p7 }
 0x243   :  { %2731 = shalt.err (!%p2728_p9)
}
 0x244   :  { %s2744_s16 = smov 128  }
 0x245   :  { %2313 = dma.vmem_to_hbm [thread:$0]  %s2308_s7, 8192, %s3731_s2, [#allocation4], %s2744_s16, %s2744_s16, %s2742_s1  }
 0x246   :  { %2736 = dma.done.wait [#allocation4], 8192  }
 0x247   :  { %2737 = vsyncadd [#allocation4], 4294959104 }
 0x248   :  { %2317 = vsyncpa [#allocation3], 1 }
 0x249   :  { %2318 = vsyncpa [#allocation6], 1 }
 0x24a   :  { %2319 = vsyncpa [#allocation4], 1 }

</bundles_post_ra>
